<compile_context>
chip_gen: v7x
topology: tpu7x:2x2x1
jax: 0.10.0
libtpu: 0.0.40
codegen_flags: <defaults>
</compile_context>

<pallas_src>
import functools

import jax
import jax.numpy as jnp
from jax.experimental import pallas as pl
from jax.experimental.pallas import tpu as pltpu


def _round_up(x, m):
    return ((x + m - 1) // m) * m


def _discriminator_kernel(x_ref, w1_ref, b1_ref, w2_ref, b2_ref, w3_ref, b3_ref, o_ref):
    """One (TM, D) batch tile: 2 bf16 MXU matmuls + f32 epilogues + VPU final layer."""
    x = x_ref[...]                                     # (TM, D) bf16

    # Layer 1: bf16 matmul on MXU, f32 accumulate, f32 bias + LeakyReLU(0.2).
    h1 = jnp.dot(x, w1_ref[...], preferred_element_type=jnp.float32)
    h1 = h1 + b1_ref[...]
    h1 = jnp.where(h1 >= 0.0, h1, 0.2 * h1)

    # Layer 2: cast activation back to bf16 only for the matmul input.
    h2 = jnp.dot(h1.astype(jnp.bfloat16), w2_ref[...],
                 preferred_element_type=jnp.float32)
    h2 = h2 + b2_ref[...]
    h2 = jnp.where(h2 >= 0.0, h2, 0.2 * h2)

    # Layer 3 (256 -> 1): N=1 matmul would waste the MXU; do a VPU broadcast-mul
    # + lane reduction instead. w3 is a (1, 256) f32 row, b3 a scalar in SMEM.
    out = jnp.sum(h2 * w3_ref[...], axis=-1, keepdims=True) + b3_ref[0]
    o_ref[...] = out.astype(o_ref.dtype)


@functools.partial(jax.jit, static_argnames=("tm",))
def discriminator_forward(img, params, *, tm=256):
    """img: (B, C, H, W) float32.  Returns validity logits (B, 1) float32."""
    B = img.shape[0]
    # Glue: flatten NCHW row-major, same as torch .view(B, -1); bf16 for the MXU.
    x = img.reshape(B, -1).astype(jnp.bfloat16)
    D = x.shape[1]

    w1 = params["w1"].astype(jnp.bfloat16)             # (D, 512)
    b1 = params["b1"].astype(jnp.float32)               # (1, 512)
    w2 = params["w2"].astype(jnp.bfloat16)              # (512, 256)
    b2 = params["b2"].astype(jnp.float32)               # (1, 256)
    w3 = params["w3"].reshape(1, -1).astype(jnp.float32)  # (1, 256) row view of (256, 1)
    b3 = params["b3"].reshape(-1).astype(jnp.float32)     # (1,) scalar in SMEM

    # Batch tile: at least one sublane-packed group (8 rows), at most `tm`.
    TM = min(tm, max(8, _round_up(B, 8)))
    B_pad = _round_up(B, TM)
    if B_pad != B:
        x = jnp.pad(x, ((0, B_pad - B), (0, 0)))

    grid = (B_pad // TM,)
    vmem = pltpu.MemorySpace.VMEM
    smem = pltpu.MemorySpace.SMEM

    def resident(shape):
        # Weight/bias blocks: same block for every grid step -> DMA'd once, stays in VMEM.
        return pl.BlockSpec(shape, lambda i: (0, 0), memory_space=vmem)

    flops = 2 * B_pad * (D * 512 + 512 * 256 + 256)
    bytes_accessed = (
        B_pad * D * 2                      # x (bf16)
        + D * 512 * 2 + 512 * 256 * 2      # w1, w2 (bf16)
        + 256 * 4 + 512 * 4 + 256 * 4 + 4  # w3, b1, b2, b3 (f32)
        + B_pad * 4                        # output
    )

    out = pl.pallas_call(
        _discriminator_kernel,
        out_shape=jax.ShapeDtypeStruct((B_pad, 1), jnp.float32),
        grid=grid,
        in_specs=[
            pl.BlockSpec((TM, D), lambda i: (i, 0), memory_space=vmem),  # x tile
            resident((D, 512)),
            resident((1, 512)),
            resident((512, 256)),
            resident((1, 256)),
            resident((1, 256)),                                          # w3 row
            pl.BlockSpec(memory_space=smem),                             # b3 scalar
        ],
        out_specs=pl.BlockSpec((TM, 1), lambda i: (i, 0), memory_space=vmem),
        compiler_params=pltpu.CompilerParams(
            dimension_semantics=("parallel",),
            vmem_limit_bytes=32 * 1024 * 1024,
        ),
        cost_estimate=pl.CostEstimate(
            flops=flops, transcendentals=0, bytes_accessed=bytes_accessed),
    )(x, w1, b1, w2, b2, w3, b3)

    return out[:B]


def init_params(key, in_features):
    """Deterministic init matching PyTorch Linear default shapes.
    Stored as (in, out) so the kernel does x @ W directly."""
    ks = jax.random.split(key, 6)

    def linear(kw, kb, fan_in, fan_out):
        bound = 1.0 / jnp.sqrt(jnp.float32(fan_in))
        w = jax.random.uniform(kw, (fan_in, fan_out), jnp.float32, -bound, bound)
        b = jax.random.uniform(kb, (1, fan_out), jnp.float32, -bound, bound)
        return w, b

    w1, b1 = linear(ks[0], ks[1], in_features, 512)
    w2, b2 = linear(ks[2], ks[3], 512, 256)
    w3, b3 = linear(ks[4], ks[5], 256, 1)
    return {"w1": w1, "b1": b1, "w2": w2, "b2": b2, "w3": w3, "b3": b3}


if __name__ == "__main__":
    # Small shapes consistent with the module: img_shape = (channels, img_size, img_size)
    B, C, H, W = 2, 4, 16, 16          # -> in_features = 4*16*16 = 1024
    key = jax.random.PRNGKey(0)
    k_img, k_par = jax.random.split(key)

    img = jax.random.normal(k_img, (B, C, H, W), dtype=jnp.float32)
    params = init_params(k_par, C * H * W)

    validity = discriminator_forward(img, params)
    jax.block_until_ready(validity)

    # Reference check in plain JAX with the same bf16 matmul / f32 epilogue precision.
    xf = img.reshape(B, -1)
    h1 = jnp.dot(xf.astype(jnp.bfloat16), params["w1"].astype(jnp.bfloat16),
                 preferred_element_type=jnp.float32) + params["b1"]
    h1 = jnp.where(h1 >= 0, h1, 0.2 * h1)
    h2 = jnp.dot(h1.astype(jnp.bfloat16), params["w2"].astype(jnp.bfloat16),
                 preferred_element_type=jnp.float32) + params["b2"]
    h2 = jnp.where(h2 >= 0, h2, 0.2 * h2)
    ref = h2 @ params["w3"] + params["b3"]

    assert validity.shape == (B, 1)
    assert jnp.allclose(validity, ref, atol=1e-2, rtol=1e-2)

    print("KERNEL_OK")
</pallas_src>

<mosaic_0001>
module attributes {stable_mosaic.version = 11 : i64} {
  func.func @_discriminator_kernel(%arg0: i32, %arg1: memref<8x1024xbf16, #tpu.memory_space<vmem>>, %arg2: memref<1024x512xbf16, #tpu.memory_space<vmem>>, %arg3: memref<1x512xf32, #tpu.memory_space<vmem>>, %arg4: memref<512x256xbf16, #tpu.memory_space<vmem>>, %arg5: memref<1x256xf32, #tpu.memory_space<vmem>>, %arg6: memref<1x256xf32, #tpu.memory_space<vmem>>, %arg7: memref<1xf32, #tpu.memory_space<smem>>, %arg8: memref<8x1xf32, #tpu.memory_space<vmem>>) attributes {dimension_semantics = [#tpu.dimension_semantics<parallel>], iteration_bounds = array<i64: 1>, scalar_prefetch = 0 : i64, scratch_operands = 0 : i64, tpu.core_type = #tpu.core_type<tc>, window_params = [{transform_indices = @transform_0, window_bounds = array<i64: 8, 1024>}, {pipeline_mode = #tpu.pipeline_mode<synchronous>, transform_indices = @transform_1, window_bounds = array<i64: 1024, 512>}, {pipeline_mode = #tpu.pipeline_mode<synchronous>, transform_indices = @transform_2, window_bounds = array<i64: 1, 512>}, {pipeline_mode = #tpu.pipeline_mode<synchronous>, transform_indices = @transform_3, window_bounds = array<i64: 512, 256>}, {pipeline_mode = #tpu.pipeline_mode<synchronous>, transform_indices = @transform_4, window_bounds = array<i64: 1, 256>}, {pipeline_mode = #tpu.pipeline_mode<synchronous>, transform_indices = @transform_5, window_bounds = array<i64: 1, 256>}, {transform_indices = @transform_6, window_bounds = array<i64: 1>}, {transform_indices = @transform_7, window_bounds = array<i64: 8, 1>}]} {
    %c0 = arith.constant 0 : index
    %c0_0 = arith.constant 0 : index
    %0 = vector.load %arg1[%c0, %c0_0] : memref<8x1024xbf16, #tpu.memory_space<vmem>>, vector<8x1024xbf16>
    %c0_1 = arith.constant 0 : index
    %c0_2 = arith.constant 0 : index
    %1 = vector.load %arg2[%c0_1, %c0_2] : memref<1024x512xbf16, #tpu.memory_space<vmem>>, vector<1024x512xbf16>
    %cst = arith.constant dense<0.000000e+00> : vector<8x512xf32>
    %2 = tpu.matmul %0, %1, %cst {dimension_numbers = #tpu.dot_dimension_numbers<[1], [0], [0], [1], [0, 0, 1, 1], [], []>} : vector<8x1024xbf16>, vector<1024x512xbf16>, vector<8x512xf32> -> vector<8x512xf32>
    %c0_3 = arith.constant 0 : index
    %c0_4 = arith.constant 0 : index
    %3 = vector.load %arg3[%c0_3, %c0_4] : memref<1x512xf32, #tpu.memory_space<vmem>>, vector<1x512xf32>
    %4 = vector.broadcast %3 : vector<1x512xf32> to vector<8x512xf32>
    %5 = arith.addf %2, %4 : vector<8x512xf32>
    %cst_5 = arith.constant 0.000000e+00 : f32
    %6 = vector.broadcast %cst_5 : f32 to vector<8x512xf32>
    %7 = arith.cmpf oge, %5, %6 : vector<8x512xf32>
    %cst_6 = arith.constant 2.000000e-01 : f32
    %8 = vector.broadcast %cst_6 : f32 to vector<8x512xf32>
    %9 = arith.mulf %8, %5 : vector<8x512xf32>
    %10 = arith.select %7, %5, %9 : vector<8x512xi1>, vector<8x512xf32>
    %11 = arith.truncf %10 : vector<8x512xf32> to vector<8x512xbf16>
    %c0_7 = arith.constant 0 : index
    %c0_8 = arith.constant 0 : index
    %12 = vector.load %arg4[%c0_7, %c0_8] : memref<512x256xbf16, #tpu.memory_space<vmem>>, vector<512x256xbf16>
    %cst_9 = arith.constant dense<0.000000e+00> : vector<8x256xf32>
    %13 = tpu.matmul %11, %12, %cst_9 {dimension_numbers = #tpu.dot_dimension_numbers<[1], [0], [0], [1], [0, 0, 1, 1], [], []>} : vector<8x512xbf16>, vector<512x256xbf16>, vector<8x256xf32> -> vector<8x256xf32>
    %c0_10 = arith.constant 0 : index
    %c0_11 = arith.constant 0 : index
    %14 = vector.load %arg5[%c0_10, %c0_11] : memref<1x256xf32, #tpu.memory_space<vmem>>, vector<1x256xf32>
    %15 = vector.broadcast %14 : vector<1x256xf32> to vector<8x256xf32>
    %16 = arith.addf %13, %15 : vector<8x256xf32>
    %cst_12 = arith.constant 0.000000e+00 : f32
    %17 = vector.broadcast %cst_12 : f32 to vector<8x256xf32>
    %18 = arith.cmpf oge, %16, %17 : vector<8x256xf32>
    %cst_13 = arith.constant 2.000000e-01 : f32
    %19 = vector.broadcast %cst_13 : f32 to vector<8x256xf32>
    %20 = arith.mulf %19, %16 : vector<8x256xf32>
    %21 = arith.select %18, %16, %20 : vector<8x256xi1>, vector<8x256xf32>
    %c0_14 = arith.constant 0 : index
    %c0_15 = arith.constant 0 : index
    %22 = vector.load %arg6[%c0_14, %c0_15] : memref<1x256xf32, #tpu.memory_space<vmem>>, vector<1x256xf32>
    %23 = vector.broadcast %22 : vector<1x256xf32> to vector<8x256xf32>
    %24 = arith.mulf %21, %23 : vector<8x256xf32>
    %cst_16 = arith.constant dense<0.000000e+00> : vector<8xf32>
    %25 = vector.multi_reduction <add>, %24, %cst_16 [1] : vector<8x256xf32> to vector<8xf32>
    %26 = vector.shape_cast %25 : vector<8xf32> to vector<8x1xf32>
    %c0_17 = arith.constant 0 : index
    %27 = memref.load %arg7[%c0_17] : memref<1xf32, #tpu.memory_space<smem>>
    %28 = vector.broadcast %27 : f32 to vector<8x1xf32>
    %29 = arith.addf %26, %28 : vector<8x1xf32>
    %c0_18 = arith.constant 0 : index
    %c0_19 = arith.constant 0 : index
    %30 = vector.load %arg8[%c0_18, %c0_19] : memref<8x1xf32, #tpu.memory_space<vmem>>, vector<8x1xf32>
    tpu.vector_store %arg8[%c0_18, %c0_19], %29 {strides = array<i32>} : memref<8x1xf32, #tpu.memory_space<vmem>>, vector<8x1xf32>,
    return
  }
  func.func @transform_0(%arg0: i32) -> (i32, i32) {
    %c0_i32 = arith.constant 0 : i32
    %c0_i32_0 = arith.constant 0 : i32
    return %arg0, %c0_i32 : i32, i32
  }
  func.func @transform_1(%arg0: i32) -> (i32, i32) {
    %c0_i32 = arith.constant 0 : i32
    %c0_i32_0 = arith.constant 0 : i32
    %c0_i32_1 = arith.constant 0 : i32
    return %c0_i32, %c0_i32_0 : i32, i32
  }
  func.func @transform_2(%arg0: i32) -> (i32, i32) {
    %c0_i32 = arith.constant 0 : i32
    %c0_i32_0 = arith.constant 0 : i32
    %c0_i32_1 = arith.constant 0 : i32
    return %c0_i32, %c0_i32_0 : i32, i32
  }
  func.func @transform_3(%arg0: i32) -> (i32, i32) {
    %c0_i32 = arith.constant 0 : i32
    %c0_i32_0 = arith.constant 0 : i32
    %c0_i32_1 = arith.constant 0 : i32
    return %c0_i32, %c0_i32_0 : i32, i32
  }
  func.func @transform_4(%arg0: i32) -> (i32, i32) {
    %c0_i32 = arith.constant 0 : i32
    %c0_i32_0 = arith.constant 0 : i32
    %c0_i32_1 = arith.constant 0 : i32
    return %c0_i32, %c0_i32_0 : i32, i32
  }
  func.func @transform_5(%arg0: i32) -> (i32, i32) {
    %c0_i32 = arith.constant 0 : i32
    %c0_i32_0 = arith.constant 0 : i32
    %c0_i32_1 = arith.constant 0 : i32
    return %c0_i32, %c0_i32_0 : i32, i32
  }
  func.func @transform_6(%arg0: i32) -> i32 {
    %c0_i32 = arith.constant 0 : i32
    %c0_i32_0 = arith.constant 0 : i32
    return %c0_i32 : i32
  }
  func.func @transform_7(%arg0: i32) -> (i32, i32) {
    %c0_i32 = arith.constant 0 : i32
    %c0_i32_0 = arith.constant 0 : i32
    return %arg0, %c0_i32 : i32, i32
  }
}

</mosaic_0001>

<bundles_post_ra>
// kernel: discriminator_forward.1
= control target key start
LH: loop header
LB: loop body
LE: loop exit
PB: predicated region body
PF: predicated region fallthrough
CT: control target
= control target key end

     0   :  { %vm2465_vm6 = vcmask 7168   ;;  %s4415_s1 = inlined_call_operand.vmem [shape: bf16[1024,512], index: 1, kind: input, shape index: {}]   ;;  %s4416_s0 = inlined_call_operand.vmem [shape: bf16[8,1024], index: 0, kind: input, shape index: {}]   ;;  %s4417_s3 = inlined_call_operand.vmem [shape: bf16[512,256], index: 3, kind: input, shape index: {}]   ;;  %s4418_s2 = inlined_call_operand.vmem [shape: f32[1,512], index: 2, kind: input, shape index: {}]   ;;  %s4419_s4 = inlined_call_operand.vmem [shape: f32[1,256], index: 4, kind: input, shape index: {}]   ;;  %s4420_s5 = inlined_call_operand.vmem [shape: f32[1,256], index: 5, kind: input, shape index: {}]   ;;  %s4421_s6 = inlined_call_operand.<no memory space> [shape: f32[1], index: 6, kind: input, shape index: {}]   ;;  %s4422_s7 = inlined_call_operand.vmem [shape: f32[8,1], index: 7, kind: output, shape index: {}]  }
   0x1   :  { %v2831_v0 = vld [vmem:[%s4415_s1 + $0x4] ss:$16 sps:$4 sm:$0xff]   ;;  %v2835_v2 = vld [vmem:[%s4415_s1] ss:$16 sps:$4 sm:$0xff]   ;;  %v28_v48 = vld [vmem:[%s4416_s0 + $0x8] sm:$0xff] }
   0x2   :  { %v2833_v1 = vld [vmem:[%s4415_s1 + $0x204] ss:$16 sps:$4 sm:$0xff]   ;;  %1617 = vmatprep.subr.bf16.mxu1 %v2831_v0  ;;  %v2836_v3 = vld [vmem:[%s4415_s1 + $0x200] ss:$16 sps:$4 sm:$0xff]   ;;  %v3511_v51 = vcombine.high %v28_v48, %v28_v48 }
   0x3   :  { %1658 = vmatprep.subr.bf16.mxu0 %v2833_v1  ;;  %v2837_v4 = vld [vmem:[%s4415_s1 + $0x24] ss:$16 sps:$4 sm:$0xff]   ;;  %1618 = vmatpush1.bf16.msra.mxu1 %v2835_v2  ;;  %v2841_v6 = vld [vmem:[%s4415_s1 + $0x20] ss:$16 sps:$4 sm:$0xff]  }
   0x4   :  { %1659 = vmatpush1.bf16.msra.mxu0 %v2836_v3  ;;  %v2839_v5 = vld [vmem:[%s4415_s1 + $0x224] ss:$16 sps:$4 sm:$0xff]   ;;  %1619 = vmatprep.subr.bf16.mxu1 %v2837_v4  ;;  %v2842_v7 = vld [vmem:[%s4415_s1 + $0x220] ss:$16 sps:$4 sm:$0xff]  }
   0x5   :  { %1660 = vmatprep.subr.bf16.mxu0 %v2839_v5  ;;  %v2843_v8 = vld [vmem:[%s4415_s1 + $0x44] ss:$16 sps:$4 sm:$0xff]   ;;  %v2847_v10 = vld [vmem:[%s4415_s1 + $0x40] ss:$16 sps:$4 sm:$0xff]   ;;  %1690 = vmatprep.mubr.bf16.mxu0 %v3511_v51  ;;  %v2936_v5 = vld [vmem:[%s4415_s1 + $0xc] ss:$16 sps:$4 sm:$0xff]  }
   0x6   :  { %v2845_v9 = vld [vmem:[%s4415_s1 + $0x244] ss:$16 sps:$4 sm:$0xff]   ;;  %v2848_v11 = vld [vmem:[%s4415_s1 + $0x240] ss:$16 sps:$4 sm:$0xff]  }
   0x7   :  { %1620 = vmatpush1.bf16.msra.mxu1 %v2841_v6  ;;  %v2849_v12 = vld [vmem:[%s4415_s1 + $0x64] ss:$16 sps:$4 sm:$0xff]   ;;  %v2853_v14 = vld [vmem:[%s4415_s1 + $0x60] ss:$16 sps:$4 sm:$0xff]  }
   0x8   :  { %1661 = vmatpush1.bf16.msra.mxu0 %v2842_v7  ;;  %1621 = vmatprep.subr.bf16.mxu1 %v2843_v8  ;;  %v2851_v13 = vld [vmem:[%s4415_s1 + $0x264] ss:$16 sps:$4 sm:$0xff]   ;;  %v2854_v15 = vld [vmem:[%s4415_s1 + $0x260] ss:$16 sps:$4 sm:$0xff]   ;;  %v3571_v7 = vcombine.low %v28_v48, %v28_v48 }
   0x9   :  { %1662 = vmatprep.subr.bf16.mxu0 %v2845_v9  ;;  %v2855_v16 = vld [vmem:[%s4415_s1 + $0x84] ss:$16 sps:$4 sm:$0xff]   ;;  %v2859_v18 = vld [vmem:[%s4415_s1 + $0x80] ss:$16 sps:$4 sm:$0xff]   ;;  %v2934_v9 = vld [vmem:[%s4415_s1 + $0x8] ss:$16 sps:$4 sm:$0xff]  }
   0xa   :  { %v2857_v17 = vld [vmem:[%s4415_s1 + $0x284] ss:$16 sps:$4 sm:$0xff]   ;;  %v2860_v19 = vld [vmem:[%s4415_s1 + $0x280] ss:$16 sps:$4 sm:$0xff]  }
   0xb   :  { %1622 = vmatpush1.bf16.msra.mxu1 %v2847_v10  ;;  %v2861_v20 = vld [vmem:[%s4415_s1 + $0xa4] ss:$16 sps:$4 sm:$0xff]   ;;  %v2865_v22 = vld [vmem:[%s4415_s1 + $0xa0] ss:$16 sps:$4 sm:$0xff]  }
   0xc   :  { %1663 = vmatpush1.bf16.msra.mxu0 %v2848_v11  ;;  %1623 = vmatprep.subr.bf16.mxu1 %v2849_v12  ;;  %v2863_v21 = vld [vmem:[%s4415_s1 + $0x2a4] ss:$16 sps:$4 sm:$0xff]   ;;  %v2866_v23 = vld [vmem:[%s4415_s1 + $0x2a0] ss:$16 sps:$4 sm:$0xff]   ;;  %v2942_v11 = vld [vmem:[%s4415_s1 + $0x2c] ss:$16 sps:$4 sm:$0xff]  }
   0xd   :  { %1664 = vmatprep.subr.bf16.mxu0 %v2851_v13  ;;  %v2867_v24 = vld [vmem:[%s4415_s1 + $0xc4] ss:$16 sps:$4 sm:$0xff]   ;;  %v2871_v26 = vld [vmem:[%s4415_s1 + $0xc0] ss:$16 sps:$4 sm:$0xff]   ;;  %v2940_v13 = vld [vmem:[%s4415_s1 + $0x28] ss:$16 sps:$4 sm:$0xff]  }
   0xe   :  { %v2869_v25 = vld [vmem:[%s4415_s1 + $0x2c4] ss:$16 sps:$4 sm:$0xff]   ;;  %v2872_v27 = vld [vmem:[%s4415_s1 + $0x2c0] ss:$16 sps:$4 sm:$0xff]  }
   0xf   :  { %1624 = vmatpush1.bf16.msra.mxu1 %v2853_v14  ;;  %v2873_v28 = vld [vmem:[%s4415_s1 + $0xe4] ss:$16 sps:$4 sm:$0xff]   ;;  %v2877_v30 = vld [vmem:[%s4415_s1 + $0xe0] ss:$16 sps:$4 sm:$0xff]  }
  0x10   :  { %1665 = vmatpush1.bf16.msra.mxu0 %v2854_v15  ;;  %1625 = vmatprep.subr.bf16.mxu1 %v2855_v16  ;;  %v2875_v29 = vld [vmem:[%s4415_s1 + $0x2e4] ss:$16 sps:$4 sm:$0xff]   ;;  %v2878_v31 = vld [vmem:[%s4415_s1 + $0x2e0] ss:$16 sps:$4 sm:$0xff]   ;;  %v2948_v15 = vld [vmem:[%s4415_s1 + $0x4c] ss:$16 sps:$4 sm:$0xff]  }
  0x11   :  { %1666 = vmatprep.subr.bf16.mxu0 %v2857_v17  ;;  %v2879_v32 = vld [vmem:[%s4415_s1 + $0x104] ss:$16 sps:$4 sm:$0xff]   ;;  %v2883_v34 = vld [vmem:[%s4415_s1 + $0x100] ss:$16 sps:$4 sm:$0xff]   ;;  %v2946_v17 = vld [vmem:[%s4415_s1 + $0x48] ss:$16 sps:$4 sm:$0xff]  }
  0x12   :  { %v2881_v33 = vld [vmem:[%s4415_s1 + $0x304] ss:$16 sps:$4 sm:$0xff]   ;;  %v2884_v35 = vld [vmem:[%s4415_s1 + $0x300] ss:$16 sps:$4 sm:$0xff]  }
  0x13   :  { %1626 = vmatpush1.bf16.msra.mxu1 %v2859_v18  ;;  %v2885_v36 = vld [vmem:[%s4415_s1 + $0x124] ss:$16 sps:$4 sm:$0xff]   ;;  %v2889_v38 = vld [vmem:[%s4415_s1 + $0x120] ss:$16 sps:$4 sm:$0xff]  }
  0x14   :  { %1667 = vmatpush1.bf16.msra.mxu0 %v2860_v19  ;;  %1627 = vmatprep.subr.bf16.mxu1 %v2861_v20  ;;  %v2887_v37 = vld [vmem:[%s4415_s1 + $0x324] ss:$16 sps:$4 sm:$0xff]   ;;  %v2890_v39 = vld [vmem:[%s4415_s1 + $0x320] ss:$16 sps:$4 sm:$0xff]   ;;  %v2954_v19 = vld [vmem:[%s4415_s1 + $0x6c] ss:$16 sps:$4 sm:$0xff]  }
  0x15   :  { %1668 = vmatprep.subr.bf16.mxu0 %v2863_v21  ;;  %v2891_v40 = vld [vmem:[%s4415_s1 + $0x144] ss:$16 sps:$4 sm:$0xff]   ;;  %v2895_v42 = vld [vmem:[%s4415_s1 + $0x140] ss:$16 sps:$4 sm:$0xff]   ;;  %v2952_v21 = vld [vmem:[%s4415_s1 + $0x68] ss:$16 sps:$4 sm:$0xff]  }
  0x16   :  { %v2893_v41 = vld [vmem:[%s4415_s1 + $0x344] ss:$16 sps:$4 sm:$0xff]   ;;  %v2896_v43 = vld [vmem:[%s4415_s1 + $0x340] ss:$16 sps:$4 sm:$0xff]  }
  0x17   :  { %1628 = vmatpush1.bf16.msra.mxu1 %v2865_v22  ;;  %v2897_v44 = vld [vmem:[%s4415_s1 + $0x164] ss:$16 sps:$4 sm:$0xff]   ;;  %v2901_v49 = vld [vmem:[%s4415_s1 + $0x160] ss:$16 sps:$4 sm:$0xff]  }
  0x18   :  { %1669 = vmatpush1.bf16.msra.mxu0 %v2866_v23  ;;  %1629 = vmatprep.subr.bf16.mxu1 %v2867_v24  ;;  %v2899_v45 = vld [vmem:[%s4415_s1 + $0x364] ss:$16 sps:$4 sm:$0xff]   ;;  %v2902_v50 = vld [vmem:[%s4415_s1 + $0x360] ss:$16 sps:$4 sm:$0xff]   ;;  %v2960_v23 = vld [vmem:[%s4415_s1 + $0x8c] ss:$16 sps:$4 sm:$0xff]  }
  0x19   :  { %1670 = vmatprep.subr.bf16.mxu0 %v2869_v25  ;;  %v27_v46 = vld [vmem:[%s4416_s0] sm:$0xff]  ;;  %v2958_v25 = vld [vmem:[%s4415_s1 + $0x88] ss:$16 sps:$4 sm:$0xff]  }
  0x1a   :  { %v3500_v47 = vcombine.high %v27_v46, %v27_v46  ;;  %v2903_v52 = vld [vmem:[%s4415_s1 + $0x184] ss:$16 sps:$4 sm:$0xff]   ;;  %v2907_v54 = vld [vmem:[%s4415_s1 + $0x180] ss:$16 sps:$4 sm:$0xff]   ;;  %v3569_v6 = vcombine.low %v27_v46, %v27_v46 }
  0x1b   :  { %1630 = vmatpush1.bf16.msra.mxu1 %v2871_v26  ;;  %v2905_v53 = vld [vmem:[%s4415_s1 + $0x384] ss:$16 sps:$4 sm:$0xff]   ;;  %v2908_v55 = vld [vmem:[%s4415_s1 + $0x380] ss:$16 sps:$4 sm:$0xff]  }
  0x1c   :  { %1671 = vmatpush1.bf16.msra.mxu0 %v2872_v27  ;;  %1631 = vmatprep.subr.bf16.mxu1 %v2873_v28  ;;  %v2909_v56 = vld [vmem:[%s4415_s1 + $0x1a4] ss:$16 sps:$4 sm:$0xff]   ;;  %v2913_v58 = vld [vmem:[%s4415_s1 + $0x1a0] ss:$16 sps:$4 sm:$0xff]   ;;  %v2966_v27 = vld [vmem:[%s4415_s1 + $0xac] ss:$16 sps:$4 sm:$0xff]  }
  0x1d   :  { %1672 = vmatprep.subr.bf16.mxu0 %v2875_v29  ;;  %1649 = vmatprep.mubr.bf16.mxu1 %v3500_v47  ;;  %v2911_v57 = vld [vmem:[%s4415_s1 + $0x3a4] ss:$16 sps:$4 sm:$0xff]   ;;  %v2914_v59 = vld [vmem:[%s4415_s1 + $0x3a0] ss:$16 sps:$4 sm:$0xff]   ;;  %v2964_v29 = vld [vmem:[%s4415_s1 + $0xa8] ss:$16 sps:$4 sm:$0xff]  }
  0x1e   :  { %v2915_v60 = vld [vmem:[%s4415_s1 + $0x1c4] ss:$16 sps:$4 sm:$0xff]   ;;  %v2919_v62 = vld [vmem:[%s4415_s1 + $0x1c0] ss:$16 sps:$4 sm:$0xff]  }
  0x1f   :  { %1632 = vmatpush1.bf16.msra.mxu1 %v2877_v30  ;;  %v2917_v61 = vld [vmem:[%s4415_s1 + $0x3c4] ss:$16 sps:$4 sm:$0xff]   ;;  %v2920_v63 = vld [vmem:[%s4415_s1 + $0x3c0] ss:$16 sps:$4 sm:$0xff]  }
  0x20   :  { %1673 = vmatpush1.bf16.msra.mxu0 %v2878_v31  ;;  %1633 = vmatprep.subr.bf16.mxu1 %v2879_v32  ;;  %v2921_v0 = vld [vmem:[%s4415_s1 + $0x1e4] ss:$16 sps:$4 sm:$0xff]   ;;  %v2925_v2 = vld [vmem:[%s4415_s1 + $0x1e0] ss:$16 sps:$4 sm:$0xff]   ;;  %v2972_v31 = vld [vmem:[%s4415_s1 + $0xcc] ss:$16 sps:$4 sm:$0xff]  }
  0x21   :  { %1674 = vmatprep.subr.bf16.mxu0 %v2881_v33  ;;  %v2923_v1 = vld [vmem:[%s4415_s1 + $0x3e4] ss:$16 sps:$4 sm:$0xff]   ;;  %v2926_v3 = vld [vmem:[%s4415_s1 + $0x3e0] ss:$16 sps:$4 sm:$0xff]  }
  0x22   :  { %v2933_v4 = vld [vmem:[%s4415_s1 + $0x404] ss:$16 sps:$4 sm:$0xff]   ;;  %v2931_v8 = vld [vmem:[%s4415_s1 + $0x400] ss:$16 sps:$4 sm:$0xff]  }
  0x23   :  { %1634 = vmatpush1.bf16.msra.mxu1 %v2883_v34  ;;  %v2939_v10 = vld [vmem:[%s4415_s1 + $0x424] ss:$16 sps:$4 sm:$0xff]   ;;  %v2937_v12 = vld [vmem:[%s4415_s1 + $0x420] ss:$16 sps:$4 sm:$0xff]  }
  0x24   :  { %1675 = vmatpush1.bf16.msra.mxu0 %v2884_v35  ;;  %1635 = vmatprep.subr.bf16.mxu1 %v2885_v36  ;;  %v2945_v14 = vld [vmem:[%s4415_s1 + $0x444] ss:$16 sps:$4 sm:$0xff]   ;;  %v2943_v16 = vld [vmem:[%s4415_s1 + $0x440] ss:$16 sps:$4 sm:$0xff]   ;;  %v2970_v35 = vld [vmem:[%s4415_s1 + $0xc8] ss:$16 sps:$4 sm:$0xff]  }
  0x25   :  { %1676 = vmatprep.subr.bf16.mxu0 %v2887_v37  ;;  %v2951_v18 = vld [vmem:[%s4415_s1 + $0x464] ss:$16 sps:$4 sm:$0xff]   ;;  %v2949_v20 = vld [vmem:[%s4415_s1 + $0x460] ss:$16 sps:$4 sm:$0xff]   ;;  %v2978_v37 = vld [vmem:[%s4415_s1 + $0xec] ss:$16 sps:$4 sm:$0xff]  }
  0x26   :  { %v2957_v22 = vld [vmem:[%s4415_s1 + $0x484] ss:$16 sps:$4 sm:$0xff]   ;;  %v2955_v24 = vld [vmem:[%s4415_s1 + $0x480] ss:$16 sps:$4 sm:$0xff]  }
  0x27   :  { %1636 = vmatpush1.bf16.msra.mxu1 %v2889_v38  ;;  %v2963_v26 = vld [vmem:[%s4415_s1 + $0x4a4] ss:$16 sps:$4 sm:$0xff]   ;;  %v2961_v28 = vld [vmem:[%s4415_s1 + $0x4a0] ss:$16 sps:$4 sm:$0xff]  }
  0x28   :  { %1677 = vmatpush1.bf16.msra.mxu0 %v2890_v39  ;;  %1637 = vmatprep.subr.bf16.mxu1 %v2891_v40  ;;  %v2969_v30 = vld [vmem:[%s4415_s1 + $0x4c4] ss:$16 sps:$4 sm:$0xff]   ;;  %v2967_v33 = vld [vmem:[%s4415_s1 + $0x4c0] ss:$16 sps:$4 sm:$0xff]   ;;  %v2976_v39 = vld [vmem:[%s4415_s1 + $0xe8] ss:$16 sps:$4 sm:$0xff]  }
  0x29   :  { %1678 = vmatprep.subr.bf16.mxu0 %v2893_v41  ;;  %v3651_v32 = vld [vmem:[%s4416_s0 + $0x10] sm:$0xff]  ;;  %v2984_v41 = vld [vmem:[%s4415_s1 + $0x10c] ss:$16 sps:$4 sm:$0xff]  }
  0x2a   :  { %v3658_v34 = vcombine.high %v3651_v32, %v3651_v32  ;;  %v2975_v36 = vld [vmem:[%s4415_s1 + $0x4e4] ss:$16 sps:$4 sm:$0xff]   ;;  %v2973_v38 = vld [vmem:[%s4415_s1 + $0x4e0] ss:$16 sps:$4 sm:$0xff]  }
  0x2b   :  { %1638 = vmatpush1.bf16.msra.mxu1 %v2895_v42  ;;  %v2981_v40 = vld [vmem:[%s4415_s1 + $0x504] ss:$16 sps:$4 sm:$0xff]   ;;  %v2979_v42 = vld [vmem:[%s4415_s1 + $0x500] ss:$16 sps:$4 sm:$0xff]  }
  0x2c   :  { %1679 = vmatpush1.bf16.msra.mxu0 %v2896_v43  ;;  %1639 = vmatprep.subr.bf16.mxu1 %v2897_v44  ;;  %v2982_v43 = vld [vmem:[%s4415_s1 + $0x108] ss:$16 sps:$4 sm:$0xff]   ;;  %v2987_v44 = vld [vmem:[%s4415_s1 + $0x524] ss:$16 sps:$4 sm:$0xff]   ;;  %v2985_v46 = vld [vmem:[%s4415_s1 + $0x520] ss:$16 sps:$4 sm:$0xff]  }
  0x2d   :  { %1680 = vmatprep.subr.bf16.mxu0 %v2899_v45  ;;  %v2990_v45 = vld [vmem:[%s4415_s1 + $0x12c] ss:$16 sps:$4 sm:$0xff]   ;;  %v2993_v48 = vld [vmem:[%s4415_s1 + $0x544] ss:$16 sps:$4 sm:$0xff]  }
  0x2f   :  { %1640 = vmatpush1.bf16.msra.mxu1 %v2901_v49  ;;  %v2996_v49 = vld [vmem:[%s4415_s1 + $0x14c] ss:$16 sps:$4 sm:$0xff]  }
  0x30   :  { %1681 = vmatpush1.bf16.msra.mxu0 %v2902_v50  ;;  %1641 = vmatprep.subr.bf16.mxu1 %v2903_v52  ;;  %v2991_v50 = vld [vmem:[%s4415_s1 + $0x540] ss:$16 sps:$4 sm:$0xff]   ;;  %v2994_v52 = vld [vmem:[%s4415_s1 + $0x148] ss:$16 sps:$4 sm:$0xff]  }
  0x31   :  { %1682 = vmatprep.subr.bf16.mxu0 %v2905_v53  ;;  %v2999_v53 = vld [vmem:[%s4415_s1 + $0x564] ss:$16 sps:$4 sm:$0xff]  }
  0x33   :  { %1642 = vmatpush1.bf16.msra.mxu1 %v2907_v54  ;;  %v3002_v54 = vld [vmem:[%s4415_s1 + $0x16c] ss:$16 sps:$4 sm:$0xff]  }
  0x34   :  { %1683 = vmatpush1.bf16.msra.mxu0 %v2908_v55  ;;  %1643 = vmatprep.subr.bf16.mxu1 %v2909_v56  ;;  %v2997_v55 = vld [vmem:[%s4415_s1 + $0x560] ss:$16 sps:$4 sm:$0xff]   ;;  %v3000_v56 = vld [vmem:[%s4415_s1 + $0x168] ss:$16 sps:$4 sm:$0xff]  }
  0x35   :  { %1684 = vmatprep.subr.bf16.mxu0 %v2911_v57  ;;  %v3005_v57 = vld [vmem:[%s4415_s1 + $0x584] ss:$16 sps:$4 sm:$0xff]  }
  0x37   :  { %1644 = vmatpush1.bf16.msra.mxu1 %v2913_v58  ;;  %v3008_v58 = vld [vmem:[%s4415_s1 + $0x18c] ss:$16 sps:$4 sm:$0xff]  }
  0x38   :  { %1685 = vmatpush1.bf16.msra.mxu0 %v2914_v59  ;;  %1645 = vmatprep.subr.bf16.mxu1 %v2915_v60  ;;  %v3003_v59 = vld [vmem:[%s4415_s1 + $0x580] ss:$16 sps:$4 sm:$0xff]   ;;  %v3006_v60 = vld [vmem:[%s4415_s1 + $0x188] ss:$16 sps:$4 sm:$0xff]  }
  0x39   :  { %1686 = vmatprep.subr.bf16.mxu0 %v2917_v61  ;;  %v3011_v61 = vld [vmem:[%s4415_s1 + $0x5a4] ss:$16 sps:$4 sm:$0xff]  }
  0x3b   :  { %1646 = vmatpush1.bf16.msra.mxu1 %v2919_v62  ;;  %v3014_v62 = vld [vmem:[%s4415_s1 + $0x1ac] ss:$16 sps:$4 sm:$0xff]  }
  0x3c   :  { %1687 = vmatpush1.bf16.msra.mxu0 %v2920_v63  ;;  %1647 = vmatprep.subr.bf16.mxu1 %v2921_v0  ;;  %v3009_v63 = vld [vmem:[%s4415_s1 + $0x5a0] ss:$16 sps:$4 sm:$0xff]   ;;  %v3012_v0 = vld [vmem:[%s4415_s1 + $0x1a8] ss:$16 sps:$4 sm:$0xff]  }
  0x3d   :  { %1688 = vmatprep.subr.bf16.mxu0 %v2923_v1  ;;  %v3017_v1 = vld [vmem:[%s4415_s1 + $0x5c4] ss:$16 sps:$4 sm:$0xff]  }
  0x3f   :  { %1648 = vmatpush1.bf16.msra.mxu1 %v2925_v2  ;;  %v3020_v2 = vld [vmem:[%s4415_s1 + $0x1cc] ss:$16 sps:$4 sm:$0xff]  }
  0x40   :  { %1689 = vmatpush1.bf16.msra.mxu0 %v2926_v3  ;;  %1781 = vmatprep.subr.bf16.mxu1 %v2936_v5  ;;  %v3015_v3 = vld [vmem:[%s4415_s1 + $0x5c0] ss:$16 sps:$4 sm:$0xff]   ;;  %v3023_v5 = vld [vmem:[%s4415_s1 + $0x5e4] ss:$16 sps:$4 sm:$0xff]  }
  0x41   :  { %1699 = vmatprep.subr.bf16.mxu0 %v2933_v4  ;;  %v3018_v4 = vld [vmem:[%s4415_s1 + $0x1c8] ss:$16 sps:$4 sm:$0xff]  }
  0x42   :  { %1650 = vmatmul.mubr.bf16.vlgmr.msra.gmra.mrb[0].mxu1 %v3569_v6 }
  0x43   :  { %1691 = vmatmul.mubr.bf16.vlgmr.msra.gmra.mrb[0].mxu0 %v3571_v7  ;;  %1782 = vmatpush1.bf16.msra.mxu1 %v2934_v9  ;;  %v3021_v9 = vld [vmem:[%s4415_s1 + $0x5e0] ss:$16 sps:$4 sm:$0xff]  }
  0x44   :  { %1700 = vmatpush1.bf16.msra.mxu0 %v2931_v8  ;;  %1783 = vmatprep.subr.bf16.mxu1 %v2942_v11  ;;  %v3026_v8 = vld [vmem:[%s4415_s1 + $0x1ec] ss:$16 sps:$4 sm:$0xff]   ;;  %v3031_v11 = vld [vmem:[%s4415_s1 + $0x604] ss:$16 sps:$4 sm:$0xff]  }
  0x45   :  { %1701 = vmatprep.subr.bf16.mxu0 %v2939_v10  ;;  %1813 = vmatprep.mubr.bf16.mxu1 %v3500_v47  ;;  %v2988_v47 = vld [vmem:[%s4415_s1 + $0x128] ss:$16 sps:$4 sm:$0xff]  }
  0x46   :  { %1731 = vmatprep.mubr.bf16.mxu0 %v3658_v34  ;;  %v3024_v10 = vld [vmem:[%s4415_s1 + $0x1e8] ss:$16 sps:$4 sm:$0xff]  }
  0x47   :  { %1784 = vmatpush1.bf16.msra.mxu1 %v2940_v13  ;;  %v3780_v13 = vcombine.low %v3651_v32, %v3651_v32  ;;  %v3061_v32 = vld [vmem:[%s4415_s1 + $0x6a4] ss:$16 sps:$4 sm:$0xff]  }
  0x48   :  { %1702 = vmatpush1.bf16.msra.mxu0 %v2937_v12  ;;  %1785 = vmatprep.subr.bf16.mxu1 %v2948_v15  ;;  %v3034_v12 = vld [vmem:[%s4415_s1 + $0x20c] ss:$16 sps:$4 sm:$0xff]   ;;  %v3032_v15 = vld [vmem:[%s4415_s1 + $0x208] ss:$16 sps:$4 sm:$0xff]  }
  0x49   :  { %1703 = vmatprep.subr.bf16.mxu0 %v2945_v14  ;;  %v3029_v14 = vld [vmem:[%s4415_s1 + $0x600] ss:$16 sps:$4 sm:$0xff]  }
  0x4b   :  { %1786 = vmatpush1.bf16.msra.mxu1 %v2946_v17  ;;  %v3040_v17 = vld [vmem:[%s4415_s1 + $0x22c] ss:$16 sps:$4 sm:$0xff]  }
  0x4c   :  { %1704 = vmatpush1.bf16.msra.mxu0 %v2943_v16  ;;  %1787 = vmatprep.subr.bf16.mxu1 %v2954_v19  ;;  %v3037_v16 = vld [vmem:[%s4415_s1 + $0x624] ss:$16 sps:$4 sm:$0xff]  }
  0x4d   :  { %1705 = vmatprep.subr.bf16.mxu0 %v2951_v18  ;;  %v3797_v18 = vld [vmem:[%s4416_s0 + $0x18] sm:$0xff] }
  0x4e   :  { %v3801_v19 = vcombine.high %v3797_v18, %v3797_v18 }
  0x4f   :  { %1788 = vmatpush1.bf16.msra.mxu1 %v2952_v21  ;;  %v3038_v21 = vld [vmem:[%s4415_s1 + $0x228] ss:$16 sps:$4 sm:$0xff]  }
  0x50   :  { %1706 = vmatpush1.bf16.msra.mxu0 %v2949_v20  ;;  %1789 = vmatprep.subr.bf16.mxu1 %v2960_v23  ;;  %v3035_v20 = vld [vmem:[%s4415_s1 + $0x620] ss:$16 sps:$4 sm:$0xff]  }
  0x51   :  { %1707 = vmatprep.subr.bf16.mxu0 %v2957_v22  ;;  %v3043_v22 = vld [vmem:[%s4415_s1 + $0x644] ss:$16 sps:$4 sm:$0xff]   ;;  %v3041_v23 = vld [vmem:[%s4415_s1 + $0x640] ss:$16 sps:$4 sm:$0xff]  }
  0x53   :  { %1790 = vmatpush1.bf16.msra.mxu1 %v2958_v25  ;;  %v3049_v25 = vld [vmem:[%s4415_s1 + $0x664] ss:$16 sps:$4 sm:$0xff]  }
  0x54   :  { %1708 = vmatpush1.bf16.msra.mxu0 %v2955_v24  ;;  %1791 = vmatprep.subr.bf16.mxu1 %v2966_v27  ;;  %v3044_v24 = vld [vmem:[%s4415_s1 + $0x248] ss:$16 sps:$4 sm:$0xff]  }
  0x55   :  { %1709 = vmatprep.subr.bf16.mxu0 %v2963_v26  ;;  %v3047_v26 = vld [vmem:[%s4415_s1 + $0x660] ss:$16 sps:$4 sm:$0xff]   ;;  %v3050_v27 = vld [vmem:[%s4415_s1 + $0x268] ss:$16 sps:$4 sm:$0xff]  }
  0x57   :  { %1792 = vmatpush1.bf16.msra.mxu1 %v2964_v29  ;;  %v3058_v29 = vld [vmem:[%s4415_s1 + $0x28c] ss:$16 sps:$4 sm:$0xff]  }
  0x58   :  { %1710 = vmatpush1.bf16.msra.mxu0 %v2961_v28  ;;  %1793 = vmatprep.subr.bf16.mxu1 %v2972_v31  ;;  %v3055_v28 = vld [vmem:[%s4415_s1 + $0x684] ss:$16 sps:$4 sm:$0xff]   ;;  %v3056_v31 = vld [vmem:[%s4415_s1 + $0x288] ss:$16 sps:$4 sm:$0xff]  }
  0x59   :  { %1711 = vmatprep.subr.bf16.mxu0 %v2969_v30  ;;  %v3053_v30 = vld [vmem:[%s4415_s1 + $0x680] ss:$16 sps:$4 sm:$0xff]  }
  0x5b   :  { %1794 = vmatpush1.bf16.msra.mxu1 %v2970_v35  ;;  %v3059_v35 = vld [vmem:[%s4415_s1 + $0x6a0] ss:$16 sps:$4 sm:$0xff]  }
  0x5c   :  { %1712 = vmatpush1.bf16.msra.mxu0 %v2967_v33  ;;  %1795 = vmatprep.subr.bf16.mxu1 %v2978_v37  ;;  %v3064_v33 = vld [vmem:[%s4415_s1 + $0x2ac] ss:$16 sps:$4 sm:$0xff]   ;;  %v3067_v37 = vld [vmem:[%s4415_s1 + $0x6c4] ss:$16 sps:$4 sm:$0xff]  }
  0x5d   :  { %1713 = vmatprep.subr.bf16.mxu0 %v2975_v36  ;;  %v3062_v36 = vld [vmem:[%s4415_s1 + $0x2a8] ss:$16 sps:$4 sm:$0xff]  }
  0x5f   :  { %1796 = vmatpush1.bf16.msra.mxu1 %v2976_v39  ;;  %v3065_v39 = vld [vmem:[%s4415_s1 + $0x6c0] ss:$16 sps:$4 sm:$0xff]  }
  0x60   :  { %1714 = vmatpush1.bf16.msra.mxu0 %v2973_v38  ;;  %1797 = vmatprep.subr.bf16.mxu1 %v2984_v41  ;;  %v3070_v38 = vld [vmem:[%s4415_s1 + $0x2cc] ss:$16 sps:$4 sm:$0xff]   ;;  %v3073_v41 = vld [vmem:[%s4415_s1 + $0x6e4] ss:$16 sps:$4 sm:$0xff]  }
  0x61   :  { %1715 = vmatprep.subr.bf16.mxu0 %v2981_v40  ;;  %v3068_v40 = vld [vmem:[%s4415_s1 + $0x2c8] ss:$16 sps:$4 sm:$0xff]  }
  0x63   :  { %1798 = vmatpush1.bf16.msra.mxu1 %v2982_v43  ;;  %v3071_v43 = vld [vmem:[%s4415_s1 + $0x6e0] ss:$16 sps:$4 sm:$0xff]  }
  0x64   :  { %1716 = vmatpush1.bf16.msra.mxu0 %v2979_v42  ;;  %1799 = vmatprep.subr.bf16.mxu1 %v2990_v45  ;;  %v3076_v42 = vld [vmem:[%s4415_s1 + $0x2ec] ss:$16 sps:$4 sm:$0xff]   ;;  %v3079_v45 = vld [vmem:[%s4415_s1 + $0x704] ss:$16 sps:$4 sm:$0xff]  }
  0x65   :  { %1717 = vmatprep.subr.bf16.mxu0 %v2987_v44  ;;  %v3074_v44 = vld [vmem:[%s4415_s1 + $0x2e8] ss:$16 sps:$4 sm:$0xff]  }
  0x67   :  { %1800 = vmatpush1.bf16.msra.mxu1 %v2988_v47  ;;  %v3077_v47 = vld [vmem:[%s4415_s1 + $0x700] ss:$16 sps:$4 sm:$0xff]  }
  0x68   :  { %1718 = vmatpush1.bf16.msra.mxu0 %v2985_v46  ;;  %1801 = vmatprep.subr.bf16.mxu1 %v2996_v49  ;;  %v3082_v46 = vld [vmem:[%s4415_s1 + $0x30c] ss:$16 sps:$4 sm:$0xff]   ;;  %v3085_v49 = vld [vmem:[%s4415_s1 + $0x724] ss:$16 sps:$4 sm:$0xff]  }
  0x69   :  { %1719 = vmatprep.subr.bf16.mxu0 %v2993_v48  ;;  %v3080_v48 = vld [vmem:[%s4415_s1 + $0x308] ss:$16 sps:$4 sm:$0xff]  }
  0x6b   :  { %1802 = vmatpush1.bf16.msra.mxu1 %v2994_v52  ;;  %v3083_v52 = vld [vmem:[%s4415_s1 + $0x720] ss:$16 sps:$4 sm:$0xff]  }
  0x6c   :  { %1720 = vmatpush1.bf16.msra.mxu0 %v2991_v50  ;;  %1803 = vmatprep.subr.bf16.mxu1 %v3002_v54  ;;  %v3088_v50 = vld [vmem:[%s4415_s1 + $0x32c] ss:$16 sps:$4 sm:$0xff]   ;;  %v3091_v54 = vld [vmem:[%s4415_s1 + $0x744] ss:$16 sps:$4 sm:$0xff]  }
  0x6d   :  { %1721 = vmatprep.subr.bf16.mxu0 %v2999_v53  ;;  %v3086_v53 = vld [vmem:[%s4415_s1 + $0x328] ss:$16 sps:$4 sm:$0xff]  }
  0x6f   :  { %1804 = vmatpush1.bf16.msra.mxu1 %v3000_v56  ;;  %v3089_v56 = vld [vmem:[%s4415_s1 + $0x740] ss:$16 sps:$4 sm:$0xff]  }
  0x70   :  { %1722 = vmatpush1.bf16.msra.mxu0 %v2997_v55  ;;  %1805 = vmatprep.subr.bf16.mxu1 %v3008_v58  ;;  %v3094_v55 = vld [vmem:[%s4415_s1 + $0x34c] ss:$16 sps:$4 sm:$0xff]   ;;  %v3097_v58 = vld [vmem:[%s4415_s1 + $0x764] ss:$16 sps:$4 sm:$0xff]  }
  0x71   :  { %1723 = vmatprep.subr.bf16.mxu0 %v3005_v57  ;;  %v3092_v57 = vld [vmem:[%s4415_s1 + $0x348] ss:$16 sps:$4 sm:$0xff]  }
  0x73   :  { %1806 = vmatpush1.bf16.msra.mxu1 %v3006_v60  ;;  %v3095_v60 = vld [vmem:[%s4415_s1 + $0x760] ss:$16 sps:$4 sm:$0xff]  }
  0x74   :  { %1724 = vmatpush1.bf16.msra.mxu0 %v3003_v59  ;;  %1807 = vmatprep.subr.bf16.mxu1 %v3014_v62  ;;  %v3100_v59 = vld [vmem:[%s4415_s1 + $0x36c] ss:$16 sps:$4 sm:$0xff]   ;;  %v3103_v62 = vld [vmem:[%s4415_s1 + $0x784] ss:$16 sps:$4 sm:$0xff]  }
  0x75   :  { %1725 = vmatprep.subr.bf16.mxu0 %v3011_v61  ;;  %v3098_v61 = vld [vmem:[%s4415_s1 + $0x368] ss:$16 sps:$4 sm:$0xff]  }
  0x77   :  { %1808 = vmatpush1.bf16.msra.mxu1 %v3012_v0  ;;  %v3101_v0 = vld [vmem:[%s4415_s1 + $0x780] ss:$16 sps:$4 sm:$0xff]  }
  0x78   :  { %1726 = vmatpush1.bf16.msra.mxu0 %v3009_v63  ;;  %1809 = vmatprep.subr.bf16.mxu1 %v3020_v2  ;;  %v3106_v63 = vld [vmem:[%s4415_s1 + $0x38c] ss:$16 sps:$4 sm:$0xff]   ;;  %v3109_v2 = vld [vmem:[%s4415_s1 + $0x7a4] ss:$16 sps:$4 sm:$0xff]  }
  0x79   :  { %1727 = vmatprep.subr.bf16.mxu0 %v3017_v1  ;;  %v3104_v1 = vld [vmem:[%s4415_s1 + $0x388] ss:$16 sps:$4 sm:$0xff]  }
  0x7b   :  { %1810 = vmatpush1.bf16.msra.mxu1 %v3018_v4  ;;  %v3107_v4 = vld [vmem:[%s4415_s1 + $0x7a0] ss:$16 sps:$4 sm:$0xff]  }
  0x7c   :  { %1728 = vmatpush1.bf16.msra.mxu0 %v3015_v3  ;;  %1811 = vmatprep.subr.bf16.mxu1 %v3026_v8  ;;  %v3112_v3 = vld [vmem:[%s4415_s1 + $0x3ac] ss:$16 sps:$4 sm:$0xff]   ;;  %v3115_v8 = vld [vmem:[%s4415_s1 + $0x7c4] ss:$16 sps:$4 sm:$0xff]  }
  0x7d   :  { %1729 = vmatprep.subr.bf16.mxu0 %v3023_v5  ;;  %v3110_v5 = vld [vmem:[%s4415_s1 + $0x3a8] ss:$16 sps:$4 sm:$0xff]  }
  0x7f   :  { %1812 = vmatpush1.bf16.msra.mxu1 %v3024_v10  ;;  %v3113_v10 = vld [vmem:[%s4415_s1 + $0x7c0] ss:$16 sps:$4 sm:$0xff]  }
  0x80   :  { %1730 = vmatpush1.bf16.msra.mxu0 %v3021_v9  ;;  %1822 = vmatprep.subr.bf16.mxu1 %v3034_v12  ;;  %v3118_v9 = vld [vmem:[%s4415_s1 + $0x3cc] ss:$16 sps:$4 sm:$0xff]   ;;  %v3121_v12 = vld [vmem:[%s4415_s1 + $0x7e4] ss:$16 sps:$4 sm:$0xff]  }
  0x81   :  { %1740 = vmatprep.subr.bf16.mxu0 %v3031_v11  ;;  %v3116_v11 = vld [vmem:[%s4415_s1 + $0x3c8] ss:$16 sps:$4 sm:$0xff]  }
  0x82   :  { %1814 = vmatmul.mubr.bf16.vlgmr.msra.gmra.mrb[4].mxu1 %v3569_v6  ;;  %v3046_v6 = vld [vmem:[%s4415_s1 + $0x24c] ss:$16 sps:$4 sm:$0xff]  }
  0x83   :  { %1732 = vmatmul.mubr.bf16.vlgmr.msra.gmra.mrb[0].mxu0 %v3780_v13  ;;  %1823 = vmatpush1.bf16.msra.mxu1 %v3032_v15  ;;  %v3119_v15 = vld [vmem:[%s4415_s1 + $0x7e0] ss:$16 sps:$4 sm:$0xff]  }
  0x84   :  { %1741 = vmatpush1.bf16.msra.mxu0 %v3029_v14  ;;  %1824 = vmatprep.subr.bf16.mxu1 %v3040_v17  ;;  %v3124_v14 = vld [vmem:[%s4415_s1 + $0x3ec] ss:$16 sps:$4 sm:$0xff]  }
  0x85   :  { %1742 = vmatprep.subr.bf16.mxu0 %v3037_v16  ;;  %1772 = vmatprep.mubr.bf16.mxu0 %v3801_v19  ;;  %v3122_v16 = vld [vmem:[%s4415_s1 + $0x3e8] ss:$16 sps:$4 sm:$0xff]   ;;  %v3129_v17 = vld [vmem:[%s4415_s1 + $0x40c] ss:$16 sps:$4 sm:$0xff]  }
  0x86   :  { %1854 = vmatprep.mubr.bf16.mxu1 %v3511_v51  ;;  %v3052_v51 = vld [vmem:[%s4415_s1 + $0x26c] ss:$16 sps:$4 sm:$0xff]  }
  0x87   :  { %1825 = vmatpush1.bf16.msra.mxu1 %v3038_v21  ;;  %v3127_v21 = vld [vmem:[%s4415_s1 + $0x408] ss:$16 sps:$4 sm:$0xff]  }
  0x88   :  { %1743 = vmatpush1.bf16.msra.mxu0 %v3035_v20  ;;  %1826 = vmatprep.subr.bf16.mxu1 %v3046_v6  ;;  %v3986_v20 = vcombine.low %v3797_v18, %v3797_v18  ;;  %v3130_v18 = vld [vmem:[%s4415_s1 + $0x428] ss:$16 sps:$4 sm:$0xff]   ;;  %v3135_v6 = vld [vmem:[%s4415_s1 + $0x44c] ss:$16 sps:$4 sm:$0xff]  }
  0x89   :  { %1744 = vmatprep.subr.bf16.mxu0 %v3043_v22  ;;  %v3132_v22 = vld [vmem:[%s4415_s1 + $0x42c] ss:$16 sps:$4 sm:$0xff]  }
  0x8b   :  { %1827 = vmatpush1.bf16.msra.mxu1 %v3044_v24  ;;  %v3228_v24 = vld [vmem:[%s4417_s3 + $0x14] ss:$8 sps:$4 sm:$0xff]  }
  0x8c   :  { %1745 = vmatpush1.bf16.msra.mxu0 %v3041_v23  ;;  %1828 = vmatprep.subr.bf16.mxu1 %v3052_v51  ;;  %v3223_v23 = vld [vmem:[%s4417_s3] ss:$8 sps:$4 sm:$0xff]   ;;  %v3226_v51 = vld [vmem:[%s4417_s3 + $0x10] ss:$8 sps:$4 sm:$0xff]  }
  0x8d   :  { %1746 = vmatprep.subr.bf16.mxu0 %v3049_v25  ;;  %v3133_v25 = vld [vmem:[%s4415_s1 + $0x448] ss:$16 sps:$4 sm:$0xff]  }
  0x8f   :  { %1829 = vmatpush1.bf16.msra.mxu1 %v3050_v27  ;;  %v3136_v27 = vld [vmem:[%s4415_s1 + $0x468] ss:$16 sps:$4 sm:$0xff]  }
  0x90   :  { %1747 = vmatpush1.bf16.msra.mxu0 %v3047_v26  ;;  %1830 = vmatprep.subr.bf16.mxu1 %v3058_v29  ;;  %v3231_v26 = vld [vmem:[%s4417_s3 + $0x24] ss:$8 sps:$4 sm:$0xff]   ;;  %v3229_v29 = vld [vmem:[%s4417_s3 + $0x20] ss:$8 sps:$4 sm:$0xff]  }
  0x91   :  { %1748 = vmatprep.subr.bf16.mxu0 %v3055_v28  ;;  %v3141_v28 = vld [vmem:[%s4415_s1 + $0x48c] ss:$16 sps:$4 sm:$0xff]  }
  0x93   :  { %1831 = vmatpush1.bf16.msra.mxu1 %v3056_v31  ;;  %v3139_v31 = vld [vmem:[%s4415_s1 + $0x488] ss:$16 sps:$4 sm:$0xff]  }
  0x94   :  { %1749 = vmatpush1.bf16.msra.mxu0 %v3053_v30  ;;  %1832 = vmatprep.subr.bf16.mxu1 %v3064_v33  ;;  %v3234_v30 = vld [vmem:[%s4417_s3 + $0x34] ss:$8 sps:$4 sm:$0xff]   ;;  %v3232_v33 = vld [vmem:[%s4417_s3 + $0x30] ss:$8 sps:$4 sm:$0xff]  }
  0x95   :  { %1750 = vmatprep.subr.bf16.mxu0 %v3061_v32  ;;  %v3144_v32 = vld [vmem:[%s4415_s1 + $0x4ac] ss:$16 sps:$4 sm:$0xff]  }
  0x97   :  { %1833 = vmatpush1.bf16.msra.mxu1 %v3062_v36  ;;  %v3142_v36 = vld [vmem:[%s4415_s1 + $0x4a8] ss:$16 sps:$4 sm:$0xff]  }
  0x98   :  { %1751 = vmatpush1.bf16.msra.mxu0 %v3059_v35  ;;  %1834 = vmatprep.subr.bf16.mxu1 %v3070_v38  ;;  %v3237_v35 = vld [vmem:[%s4417_s3 + $0x44] ss:$8 sps:$4 sm:$0xff]   ;;  %v3235_v38 = vld [vmem:[%s4417_s3 + $0x40] ss:$8 sps:$4 sm:$0xff]  }
  0x99   :  { %1752 = vmatprep.subr.bf16.mxu0 %v3067_v37  ;;  %v3147_v37 = vld [vmem:[%s4415_s1 + $0x4cc] ss:$16 sps:$4 sm:$0xff]  }
  0x9b   :  { %1835 = vmatpush1.bf16.msra.mxu1 %v3068_v40  ;;  %v3145_v40 = vld [vmem:[%s4415_s1 + $0x4c8] ss:$16 sps:$4 sm:$0xff]  }
  0x9c   :  { %1753 = vmatpush1.bf16.msra.mxu0 %v3065_v39  ;;  %1836 = vmatprep.subr.bf16.mxu1 %v3076_v42  ;;  %v3240_v39 = vld [vmem:[%s4417_s3 + $0x54] ss:$8 sps:$4 sm:$0xff]  }
  0x9d   :  { %1754 = vmatprep.subr.bf16.mxu0 %v3073_v41  ;;  %v3238_v41 = vld [vmem:[%s4417_s3 + $0x50] ss:$8 sps:$4 sm:$0xff]   ;;  %v3150_v42 = vld [vmem:[%s4415_s1 + $0x4ec] ss:$16 sps:$4 sm:$0xff]  }
  0x9f   :  { %1837 = vmatpush1.bf16.msra.mxu1 %v3074_v44  ;;  %v3148_v44 = vld [vmem:[%s4415_s1 + $0x4e8] ss:$16 sps:$4 sm:$0xff]  }
  0xa0   :  { %1755 = vmatpush1.bf16.msra.mxu0 %v3071_v43  ;;  %1838 = vmatprep.subr.bf16.mxu1 %v3082_v46  ;;  %v3243_v43 = vld [vmem:[%s4417_s3 + $0x64] ss:$8 sps:$4 sm:$0xff]  }
  0xa1   :  { %1756 = vmatprep.subr.bf16.mxu0 %v3079_v45  ;;  %v3241_v45 = vld [vmem:[%s4417_s3 + $0x60] ss:$8 sps:$4 sm:$0xff]   ;;  %v3153_v46 = vld [vmem:[%s4415_s1 + $0x50c] ss:$16 sps:$4 sm:$0xff]  }
  0xa3   :  { %1839 = vmatpush1.bf16.msra.mxu1 %v3080_v48  ;;  %v3151_v48 = vld [vmem:[%s4415_s1 + $0x508] ss:$16 sps:$4 sm:$0xff]  }
  0xa4   :  { %1757 = vmatpush1.bf16.msra.mxu0 %v3077_v47  ;;  %1840 = vmatprep.subr.bf16.mxu1 %v3088_v50  ;;  %v3246_v47 = vld [vmem:[%s4417_s3 + $0x74] ss:$8 sps:$4 sm:$0xff]  }
  0xa5   :  { %1758 = vmatprep.subr.bf16.mxu0 %v3085_v49  ;;  %v3244_v49 = vld [vmem:[%s4417_s3 + $0x70] ss:$8 sps:$4 sm:$0xff]   ;;  %v3156_v50 = vld [vmem:[%s4415_s1 + $0x52c] ss:$16 sps:$4 sm:$0xff]  }
  0xa7   :  { %1841 = vmatpush1.bf16.msra.mxu1 %v3086_v53  ;;  %v3154_v53 = vld [vmem:[%s4415_s1 + $0x528] ss:$16 sps:$4 sm:$0xff]  }
  0xa8   :  { %1759 = vmatpush1.bf16.msra.mxu0 %v3083_v52  ;;  %1842 = vmatprep.subr.bf16.mxu1 %v3094_v55  ;;  %v3249_v52 = vld [vmem:[%s4417_s3 + $0x84] ss:$8 sps:$4 sm:$0xff]  }
  0xa9   :  { %1760 = vmatprep.subr.bf16.mxu0 %v3091_v54  ;;  %v3247_v54 = vld [vmem:[%s4417_s3 + $0x80] ss:$8 sps:$4 sm:$0xff]   ;;  %v3159_v55 = vld [vmem:[%s4415_s1 + $0x54c] ss:$16 sps:$4 sm:$0xff]  }
  0xab   :  { %1843 = vmatpush1.bf16.msra.mxu1 %v3092_v57  ;;  %v3157_v57 = vld [vmem:[%s4415_s1 + $0x548] ss:$16 sps:$4 sm:$0xff]  }
  0xac   :  { %1761 = vmatpush1.bf16.msra.mxu0 %v3089_v56  ;;  %1844 = vmatprep.subr.bf16.mxu1 %v3100_v59  ;;  %v3252_v56 = vld [vmem:[%s4417_s3 + $0x94] ss:$8 sps:$4 sm:$0xff]  }
  0xad   :  { %1762 = vmatprep.subr.bf16.mxu0 %v3097_v58  ;;  %v3250_v58 = vld [vmem:[%s4417_s3 + $0x90] ss:$8 sps:$4 sm:$0xff]   ;;  %v3162_v59 = vld [vmem:[%s4415_s1 + $0x56c] ss:$16 sps:$4 sm:$0xff]  }
  0xaf   :  { %1845 = vmatpush1.bf16.msra.mxu1 %v3098_v61  ;;  %v3160_v61 = vld [vmem:[%s4415_s1 + $0x568] ss:$16 sps:$4 sm:$0xff]  }
  0xb0   :  { %1763 = vmatpush1.bf16.msra.mxu0 %v3095_v60  ;;  %1846 = vmatprep.subr.bf16.mxu1 %v3106_v63  ;;  %v3255_v60 = vld [vmem:[%s4417_s3 + $0xa4] ss:$8 sps:$4 sm:$0xff]  }
  0xb1   :  { %1764 = vmatprep.subr.bf16.mxu0 %v3103_v62  ;;  %v3253_v62 = vld [vmem:[%s4417_s3 + $0xa0] ss:$8 sps:$4 sm:$0xff]   ;;  %v3165_v63 = vld [vmem:[%s4415_s1 + $0x58c] ss:$16 sps:$4 sm:$0xff]  }
  0xb3   :  { %1847 = vmatpush1.bf16.msra.mxu1 %v3104_v1  ;;  %v3163_v1 = vld [vmem:[%s4415_s1 + $0x588] ss:$16 sps:$4 sm:$0xff]  }
  0xb4   :  { %1765 = vmatpush1.bf16.msra.mxu0 %v3101_v0  ;;  %1848 = vmatprep.subr.bf16.mxu1 %v3112_v3  ;;  %v3258_v0 = vld [vmem:[%s4417_s3 + $0xb4] ss:$8 sps:$4 sm:$0xff]  }
  0xb5   :  { %1766 = vmatprep.subr.bf16.mxu0 %v3109_v2  ;;  %v3256_v2 = vld [vmem:[%s4417_s3 + $0xb0] ss:$8 sps:$4 sm:$0xff]   ;;  %v3168_v3 = vld [vmem:[%s4415_s1 + $0x5ac] ss:$16 sps:$4 sm:$0xff]  }
  0xb7   :  { %1849 = vmatpush1.bf16.msra.mxu1 %v3110_v5  ;;  %v3166_v5 = vld [vmem:[%s4415_s1 + $0x5a8] ss:$16 sps:$4 sm:$0xff]  }
  0xb8   :  { %1767 = vmatpush1.bf16.msra.mxu0 %v3107_v4  ;;  %1850 = vmatprep.subr.bf16.mxu1 %v3118_v9  ;;  %v3261_v4 = vld [vmem:[%s4417_s3 + $0xc4] ss:$8 sps:$4 sm:$0xff]  }
  0xb9   :  { %1768 = vmatprep.subr.bf16.mxu0 %v3115_v8  ;;  %v3259_v8 = vld [vmem:[%s4417_s3 + $0xc0] ss:$8 sps:$4 sm:$0xff]   ;;  %v3171_v9 = vld [vmem:[%s4415_s1 + $0x5cc] ss:$16 sps:$4 sm:$0xff]  }
  0xbb   :  { %1851 = vmatpush1.bf16.msra.mxu1 %v3116_v11  ;;  %v3169_v11 = vld [vmem:[%s4415_s1 + $0x5c8] ss:$16 sps:$4 sm:$0xff]  }
  0xbc   :  { %1769 = vmatpush1.bf16.msra.mxu0 %v3113_v10  ;;  %1852 = vmatprep.subr.bf16.mxu1 %v3124_v14  ;;  %v3264_v10 = vld [vmem:[%s4417_s3 + $0xd4] ss:$8 sps:$4 sm:$0xff]  }
  0xbd   :  { %1770 = vmatprep.subr.bf16.mxu0 %v3121_v12  ;;  %v3262_v12 = vld [vmem:[%s4417_s3 + $0xd0] ss:$8 sps:$4 sm:$0xff]   ;;  %v3174_v14 = vld [vmem:[%s4415_s1 + $0x5ec] ss:$16 sps:$4 sm:$0xff]  }
  0xbf   :  { %1853 = vmatpush1.bf16.msra.mxu1 %v3122_v16  ;;  %v3177_v16 = vld [vmem:[%s4415_s1 + $0x60c] ss:$16 sps:$4 sm:$0xff]  }
  0xc0   :  { %1771 = vmatpush1.bf16.msra.mxu0 %v3119_v15  ;;  %1863 = vmatprep.subr.bf16.mxu1 %v3129_v17  ;;  %v3172_v15 = vld [vmem:[%s4415_s1 + $0x5e8] ss:$16 sps:$4 sm:$0xff]  }
  0xc1   :  { %v3175_v17 = vld [vmem:[%s4415_s1 + $0x608] ss:$16 sps:$4 sm:$0xff]  }
  0xc2   :  { %1855 = vmatmul.mubr.bf16.vlgmr.msra.gmra.mrb[4].mxu1 %v3571_v7  ;;  %v3225_v7 = vld [vmem:[%s4417_s3 + $0x4] ss:$8 sps:$4 sm:$0xff]  }
  0xc3   :  { %1773 = vmatmul.mubr.bf16.vlgmr.msra.gmra.mrb[0].mxu0 %v3986_v20  ;;  %1864 = vmatpush1.bf16.msra.mxu1 %v3127_v21  ;;  %v3180_v21 = vld [vmem:[%s4415_s1 + $0x62c] ss:$16 sps:$4 sm:$0xff]  }
  0xc4   :  { %1895 = vmatprep.mubr.bf16.mxu1 %v3658_v34  ;;  %1865 = vmatprep.subr.bf16.mxu1 %v3132_v22  ;;  %v3138_v34 = vld [vmem:[%s4415_s1 + $0x46c] ss:$16 sps:$4 sm:$0xff]   ;;  %v3178_v22 = vld [vmem:[%s4415_s1 + $0x628] ss:$16 sps:$4 sm:$0xff]  }
  0xc5   :  { %2357 = vmatprep.subr.bf16.mxu0 %v3225_v7  ;;  %v3187_v7 = vld [vmem:[%s4415_s1 + $0x688] ss:$16 sps:$4 sm:$0xff]  }
  0xc6   :  { %2358 = vmatpush1.bf16.msra.mxu0 %v3223_v23  ;;  %v3189_v23 = vld [vmem:[%s4415_s1 + $0x68c] ss:$16 sps:$4 sm:$0xff]  }
  0xc7   :  { %1866 = vmatpush1.bf16.msra.mxu1 %v3130_v18  ;;  %2359 = vmatprep.subr.bf16.mxu0 %v3228_v24  ;;  %v3183_v18 = vld [vmem:[%s4415_s1 + $0x64c] ss:$16 sps:$4 sm:$0xff]  }
  0xc8   :  { %1867 = vmatprep.subr.bf16.mxu1 %v3135_v6  ;;  %v3181_v6 = vld [vmem:[%s4415_s1 + $0x648] ss:$16 sps:$4 sm:$0xff]   ;;  %v3192_v24 = vld [vmem:[%s4415_s1 + $0x6ac] ss:$16 sps:$4 sm:$0xff]  }
  0xca   :  { %2360 = vmatpush1.bf16.msra.mxu0 %v3226_v51 }
  0xcb   :  { %1868 = vmatpush1.bf16.msra.mxu1 %v3133_v25  ;;  %2361 = vmatprep.subr.bf16.mxu0 %v3231_v26  ;;  %v3190_v25 = vld [vmem:[%s4415_s1 + $0x6a8] ss:$16 sps:$4 sm:$0xff]   ;;  %v3267_v26 = vld [vmem:[%s4417_s3 + $0xe4] ss:$8 sps:$4 sm:$0xff]  }
  0xcc   :  { %1869 = vmatprep.subr.bf16.mxu1 %v3138_v34  ;;  %v3195_v34 = vld [vmem:[%s4415_s1 + $0x6cc] ss:$16 sps:$4 sm:$0xff]  }
  0xce   :  { %2362 = vmatpush1.bf16.msra.mxu0 %v3229_v29 }
  0xcf   :  { %1870 = vmatpush1.bf16.msra.mxu1 %v3136_v27  ;;  %2363 = vmatprep.subr.bf16.mxu0 %v3234_v30  ;;  %v3193_v30 = vld [vmem:[%s4415_s1 + $0x6c8] ss:$16 sps:$4 sm:$0xff]  }
  0xd0   :  { %1871 = vmatprep.subr.bf16.mxu1 %v3141_v28  ;;  %v3265_v28 = vld [vmem:[%s4417_s3 + $0xe0] ss:$8 sps:$4 sm:$0xff]  }
  0xd2   :  { %2364 = vmatpush1.bf16.msra.mxu0 %v3232_v33  ;;  %v3270_v33 = vld [vmem:[%s4417_s3 + $0xf4] ss:$8 sps:$4 sm:$0xff]  }
  0xd3   :  { %1872 = vmatpush1.bf16.msra.mxu1 %v3139_v31  ;;  %2365 = vmatprep.subr.bf16.mxu0 %v3237_v35  ;;  %v3268_v35 = vld [vmem:[%s4417_s3 + $0xf0] ss:$8 sps:$4 sm:$0xff]  }
  0xd4   :  { %1873 = vmatprep.subr.bf16.mxu1 %v3144_v32  ;;  %v3198_v32 = vld [vmem:[%s4415_s1 + $0x6ec] ss:$16 sps:$4 sm:$0xff]  }
  0xd6   :  { %2366 = vmatpush1.bf16.msra.mxu0 %v3235_v38  ;;  %v3199_v38 = vld [vmem:[%s4415_s1 + $0x708] ss:$16 sps:$4 sm:$0xff]  }
  0xd7   :  { %1874 = vmatpush1.bf16.msra.mxu1 %v3142_v36  ;;  %2367 = vmatprep.subr.bf16.mxu0 %v3240_v39  ;;  %v3196_v36 = vld [vmem:[%s4415_s1 + $0x6e8] ss:$16 sps:$4 sm:$0xff]   ;;  %v3273_v39 = vld [vmem:[%s4417_s3 + $0x104] ss:$8 sps:$4 sm:$0xff]  }
  0xd8   :  { %1875 = vmatprep.subr.bf16.mxu1 %v3147_v37  ;;  %v3201_v37 = vld [vmem:[%s4415_s1 + $0x70c] ss:$16 sps:$4 sm:$0xff]  }
  0xda   :  { %2368 = vmatpush1.bf16.msra.mxu0 %v3238_v41  ;;  %v3202_v41 = vld [vmem:[%s4415_s1 + $0x728] ss:$16 sps:$4 sm:$0xff]  }
  0xdb   :  { %1876 = vmatpush1.bf16.msra.mxu1 %v3145_v40  ;;  %2369 = vmatprep.subr.bf16.mxu0 %v3243_v43  ;;  %v3204_v40 = vld [vmem:[%s4415_s1 + $0x72c] ss:$16 sps:$4 sm:$0xff]   ;;  %v3205_v43 = vld [vmem:[%s4415_s1 + $0x748] ss:$16 sps:$4 sm:$0xff]  }
  0xdc   :  { %1877 = vmatprep.subr.bf16.mxu1 %v3150_v42  ;;  %v3207_v42 = vld [vmem:[%s4415_s1 + $0x74c] ss:$16 sps:$4 sm:$0xff]  }
  0xde   :  { %2370 = vmatpush1.bf16.msra.mxu0 %v3241_v45  ;;  %v3208_v45 = vld [vmem:[%s4415_s1 + $0x768] ss:$16 sps:$4 sm:$0xff]  }
  0xdf   :  { %1878 = vmatpush1.bf16.msra.mxu1 %v3148_v44  ;;  %2371 = vmatprep.subr.bf16.mxu0 %v3246_v47  ;;  %v3210_v44 = vld [vmem:[%s4415_s1 + $0x76c] ss:$16 sps:$4 sm:$0xff]   ;;  %v3211_v47 = vld [vmem:[%s4415_s1 + $0x788] ss:$16 sps:$4 sm:$0xff]  }
  0xe0   :  { %1879 = vmatprep.subr.bf16.mxu1 %v3153_v46  ;;  %v3213_v46 = vld [vmem:[%s4415_s1 + $0x78c] ss:$16 sps:$4 sm:$0xff]  }
  0xe2   :  { %2372 = vmatpush1.bf16.msra.mxu0 %v3244_v49  ;;  %v3214_v49 = vld [vmem:[%s4415_s1 + $0x7a8] ss:$16 sps:$4 sm:$0xff]  }
  0xe3   :  { %1880 = vmatpush1.bf16.msra.mxu1 %v3151_v48  ;;  %2373 = vmatprep.subr.bf16.mxu0 %v3249_v52  ;;  %v3216_v48 = vld [vmem:[%s4415_s1 + $0x7ac] ss:$16 sps:$4 sm:$0xff]   ;;  %v3217_v52 = vld [vmem:[%s4415_s1 + $0x7c8] ss:$16 sps:$4 sm:$0xff]  }
  0xe4   :  { %1881 = vmatprep.subr.bf16.mxu1 %v3156_v50  ;;  %v3219_v50 = vld [vmem:[%s4415_s1 + $0x7cc] ss:$16 sps:$4 sm:$0xff]  }
  0xe6   :  { %2374 = vmatpush1.bf16.msra.mxu0 %v3247_v54  ;;  %v3220_v54 = vld [vmem:[%s4415_s1 + $0x7e8] ss:$16 sps:$4 sm:$0xff]  }
  0xe7   :  { %1882 = vmatpush1.bf16.msra.mxu1 %v3154_v53  ;;  %2375 = vmatprep.subr.bf16.mxu0 %v3252_v56  ;;  %v3222_v53 = vld [vmem:[%s4415_s1 + $0x7ec] ss:$16 sps:$4 sm:$0xff]  }
  0xe8   :  { %1883 = vmatprep.subr.bf16.mxu1 %v3159_v55  ;;  %v289_v55 = vlaneseq }
  0xea   :  { %2376 = vmatpush1.bf16.msra.mxu0 %v3250_v58  ;;  %v4284_v56 = vshrl.u32 %v289_v55, 7  ;;  %v4292_v58 = vld [vmem:[%s4418_s2] sm:$0xf] }
  0xeb   :  { %1884 = vmatpush1.bf16.msra.mxu1 %v3157_v57  ;;  %2377 = vmatprep.subr.bf16.mxu0 %v3255_v60 }
  0xec   :  { %1885 = vmatprep.subr.bf16.mxu1 %v3162_v59  ;;  %v4287_v57 = vsub.s32 0, %v4284_v56  ;;  %v4295_v59 = vsub.s32 1, %v4284_v56 }
  0xee   :  { %2378 = vmatpush1.bf16.msra.mxu0 %v3253_v62  ;;  %v292_v60 = vrot.slane %v4292_v58, %v4287_v57 }
  0xef   :  { %1886 = vmatpush1.bf16.msra.mxu1 %v3160_v61  ;;  %2379 = vmatprep.subr.bf16.mxu0 %v3258_v0 }
  0xf0   :  { %1887 = vmatprep.subr.bf16.mxu1 %v3165_v63 }
  0xf2   :  { %2380 = vmatpush1.bf16.msra.mxu0 %v3256_v2 }
  0xf3   :  { %1888 = vmatpush1.bf16.msra.mxu1 %v3163_v1  ;;  %2381 = vmatprep.subr.bf16.mxu0 %v3261_v4 }
  0xf4   :  { %1889 = vmatprep.subr.bf16.mxu1 %v3168_v3 }
  0xf6   :  { %2382 = vmatpush1.bf16.msra.mxu0 %v3259_v8 }
  0xf7   :  { %1890 = vmatpush1.bf16.msra.mxu1 %v3166_v5  ;;  %2383 = vmatprep.subr.bf16.mxu0 %v3264_v10 }
  0xf8   :  { %1891 = vmatprep.subr.bf16.mxu1 %v3171_v9 }
  0xfa   :  { %2384 = vmatpush1.bf16.msra.mxu0 %v3262_v12  ;;  %v3271_v12 = vld [vmem:[%s4417_s3 + $0x100] ss:$8 sps:$4 sm:$0xff]  }
  0xfb   :  { %1892 = vmatpush1.bf16.msra.mxu1 %v3169_v11  ;;  %2385 = vmatprep.subr.bf16.mxu0 %v3267_v26  ;;  %v3295_v26 = vld [vmem:[%s4417_s3 + $0x180] ss:$8 sps:$4 sm:$0xff]  }
  0xfc   :  { %1893 = vmatprep.subr.bf16.mxu1 %v3174_v14 }
  0xfe   :  { %2386 = vmatpush1.bf16.msra.mxu0 %v3265_v28  ;;  %v3298_v28 = vld [vmem:[%s4417_s3 + $0x190] ss:$8 sps:$4 sm:$0xff]  }
  0xff   :  { %1894 = vmatpush1.bf16.msra.mxu1 %v3172_v15  ;;  %2387 = vmatprep.subr.bf16.mxu0 %v3270_v33  ;;  %v3276_v15 = vld [vmem:[%s4417_s3 + $0x114] ss:$8 sps:$4 sm:$0xff]   ;;  %v3309_v33 = vld [vmem:[%s4417_s3 + $0x1c4] ss:$8 sps:$4 sm:$0xff]  }
 0x100   :  { %1904 = vmatprep.subr.bf16.mxu1 %v3177_v16  ;;  %v3274_v16 = vld [vmem:[%s4417_s3 + $0x110] ss:$8 sps:$4 sm:$0xff]  }
 0x102   :  { %1896 = vmatmul.mubr.bf16.vlgmr.msra.gmra.mrb[4].mxu1 %v3780_v13  ;;  %v3186_v13 = vld [vmem:[%s4415_s1 + $0x66c] ss:$16 sps:$4 sm:$0xff]   ;;  %2388 = vmatpush1.bf16.msra.mxu0 %v3268_v35  ;;  %v3307_v35 = vld [vmem:[%s4417_s3 + $0x1c0] ss:$8 sps:$4 sm:$0xff]  }
 0x103   :  { %1905 = vmatpush1.bf16.msra.mxu1 %v3175_v17  ;;  %1936 = vmatprep.mubr.bf16.mxu1 %v3801_v19  ;;  %v3184_v19 = vld [vmem:[%s4415_s1 + $0x668] ss:$16 sps:$4 sm:$0xff]   ;;  %v3279_v17 = vld [vmem:[%s4417_s3 + $0x124] ss:$8 sps:$4 sm:$0xff]  }
 0x104   :  { %1906 = vmatprep.subr.bf16.mxu1 %v3180_v21  ;;  %2398 = vmatprep.subr.bf16.mxu0 %v3273_v39  ;;  %v3277_v21 = vld [vmem:[%s4417_s3 + $0x120] ss:$8 sps:$4 sm:$0xff]  }
 0x105   :  { %v3313_v39 = vld [vmem:[%s4417_s3 + $0x1e0] ss:$8 sps:$4 sm:$0xff]  }
 0x107   :  { %1907 = vmatpush1.bf16.msra.mxu1 %v3178_v22  ;;  %v3282_v22 = vld [vmem:[%s4417_s3 + $0x134] ss:$8 sps:$4 sm:$0xff]  }
 0x108   :  { %1908 = vmatprep.subr.bf16.mxu1 %v3183_v18  ;;  %v3280_v18 = vld [vmem:[%s4417_s3 + $0x130] ss:$8 sps:$4 sm:$0xff]  }
 0x10b   :  { %1909 = vmatpush1.bf16.msra.mxu1 %v3181_v6  ;;  %v3285_v6 = vld [vmem:[%s4417_s3 + $0x144] ss:$8 sps:$4 sm:$0xff]  }
 0x10c   :  { %1910 = vmatprep.subr.bf16.mxu1 %v3186_v13  ;;  %v3283_v13 = vld [vmem:[%s4417_s3 + $0x140] ss:$8 sps:$4 sm:$0xff]  }
 0x10f   :  { %1911 = vmatpush1.bf16.msra.mxu1 %v3184_v19  ;;  %v3288_v19 = vld [vmem:[%s4417_s3 + $0x154] ss:$8 sps:$4 sm:$0xff]  }
 0x110   :  { %1912 = vmatprep.subr.bf16.mxu1 %v3189_v23  ;;  %v3286_v23 = vld [vmem:[%s4417_s3 + $0x150] ss:$8 sps:$4 sm:$0xff]  }
 0x113   :  { %1913 = vmatpush1.bf16.msra.mxu1 %v3187_v7  ;;  %v3291_v7 = vld [vmem:[%s4417_s3 + $0x164] ss:$8 sps:$4 sm:$0xff]  }
 0x114   :  { %1914 = vmatprep.subr.bf16.mxu1 %v3192_v24  ;;  %v3289_v24 = vld [vmem:[%s4417_s3 + $0x160] ss:$8 sps:$4 sm:$0xff]  }
 0x115   :  { %v4209_v51 = vpop.f32.mrb[0].mxu1 }
 0x116   :  { %v1653_v27 = vpop.f32.mrb[1].mxu1  ;;  %v1652_v61 = vadd.f32 %v4209_v51, %v292_v60  ;;  %v3297_v51 = vld [vmem:[%s4417_s3 + $0x184] ss:$8 sps:$4 sm:$0xff]  }
 0x117   :  { %v1655_v29 = vpop.f32.mrb[2].mxu1  ;;  %1915 = vmatpush1.bf16.msra.mxu1 %v3190_v25  ;;  %v3294_v25 = vld [vmem:[%s4417_s3 + $0x174] ss:$8 sps:$4 sm:$0xff]  }
 0x118   :  { %v1656_v31 = vpop.f32.mrb[3].mxu1  ;;  %1916 = vmatprep.subr.bf16.mxu1 %v3195_v34  ;;  %v3292_v34 = vld [vmem:[%s4417_s3 + $0x170] ss:$8 sps:$4 sm:$0xff]   ;;  %v3303_v29 = vld [vmem:[%s4417_s3 + $0x1a4] ss:$8 sps:$4 sm:$0xff]  }
 0x119   :  { %v3306_v31 = vld [vmem:[%s4417_s3 + $0x1b4] ss:$8 sps:$4 sm:$0xff]  }
 0x11b   :  { %1917 = vmatpush1.bf16.msra.mxu1 %v3193_v30  ;;  %v3301_v30 = vld [vmem:[%s4417_s3 + $0x1a0] ss:$8 sps:$4 sm:$0xff]  }
 0x11c   :  { %1918 = vmatprep.subr.bf16.mxu1 %v3198_v32  ;;  %v3304_v32 = vld [vmem:[%s4417_s3 + $0x1b0] ss:$8 sps:$4 sm:$0xff]  }
 0x11f   :  { %1919 = vmatpush1.bf16.msra.mxu1 %v3196_v36  ;;  %v3312_v36 = vld [vmem:[%s4417_s3 + $0x1d4] ss:$8 sps:$4 sm:$0xff]  }
 0x120   :  { %1920 = vmatprep.subr.bf16.mxu1 %v3201_v37  ;;  %v3310_v37 = vld [vmem:[%s4417_s3 + $0x1d0] ss:$8 sps:$4 sm:$0xff]  }
 0x123   :  { %1921 = vmatpush1.bf16.msra.mxu1 %v3199_v38  ;;  %v3315_v38 = vld [vmem:[%s4417_s3 + $0x1e4] ss:$8 sps:$4 sm:$0xff]  }
 0x124   :  { %1922 = vmatprep.subr.bf16.mxu1 %v3204_v40  ;;  %v3318_v40 = vld [vmem:[%s4417_s3 + $0x1f4] ss:$8 sps:$4 sm:$0xff]  }
 0x127   :  { %1923 = vmatpush1.bf16.msra.mxu1 %v3202_v41  ;;  %v3316_v41 = vld [vmem:[%s4417_s3 + $0x1f0] ss:$8 sps:$4 sm:$0xff]  }
 0x128   :  { %1924 = vmatprep.subr.bf16.mxu1 %v3207_v42  ;;  %v299_v42 = vsub.s32 2, %v4284_v56 }
 0x12b   :  { %1925 = vmatpush1.bf16.msra.mxu1 %v3205_v43  ;;  %v303_v43 = vsub.s32 3, %v4284_v56  ;;  %v2025_v56 = vld [vmem:[%s4419_s4] sm:$0x3] }
 0x12c   :  { %1926 = vmatprep.subr.bf16.mxu1 %v3210_v44  ;;  %v300_v44 = vrot.slane %v4292_v58, %v299_v42 }
 0x12f   :  { %1927 = vmatpush1.bf16.msra.mxu1 %v3208_v45  ;;  %v304_v45 = vrot.slane %v4292_v58, %v303_v43 }
 0x130   :  { %1928 = vmatprep.subr.bf16.mxu1 %v3213_v46 }
 0x133   :  { %1929 = vmatpush1.bf16.msra.mxu1 %v3211_v47 }
 0x134   :  { %1930 = vmatprep.subr.bf16.mxu1 %v3216_v48 }
 0x137   :  { %1931 = vmatpush1.bf16.msra.mxu1 %v3214_v49 }
 0x138   :  { %1932 = vmatprep.subr.bf16.mxu1 %v3219_v50 }
 0x13b   :  { %1933 = vmatpush1.bf16.msra.mxu1 %v3217_v52 }
 0x13c   :  { %1934 = vmatprep.subr.bf16.mxu1 %v3222_v53 }
 0x13f   :  { %1935 = vmatpush1.bf16.msra.mxu1 %v3220_v54 }
 0x142   :  { %1937 = vmatmul.mubr.bf16.vlgmr.msra.gmra.mrb[4].mxu1 %v3986_v20  ;;  %v296_v20 = vrot.slane %v4292_v58, %v4295_v59  ;;  %v2030_v58 = vrot.slane %v2025_v56, %v4287_v57 }
 0x144   :  { %v1654_v62 = vadd.f32 %v1653_v27, %v296_v20  ;;  %v3300_v27 = vld [vmem:[%s4417_s3 + $0x194] ss:$8 sps:$4 sm:$0xff]  }
 0x196   :  { %v1774_v63 = vpop.f32.mrb[0].mxu0 }
 0x197   :  { %v2800_v0 = vadd.f32 %v1774_v63, %v1652_v61  ;;  %v1776_v1 = vpop.f32.mrb[1].mxu0  ;;  %v2445_v63 = vld [vmem:[%s4420_s5] sm:$0x3] }
 0x198   :  { %v2802_v2 = vadd.f32 %v1776_v1, %v1654_v62  ;;  %v1778_v3 = vpop.f32.mrb[2].mxu0  ;;  %v2034_v62 = vrot.slane %v2025_v56, %v4295_v59 }
 0x199   :  { %vm1945_vm0 = vcmp.ge.f32.partialorder %v2800_v0, 0.0  ;;  %v1949_v4 = vmul.f32 0.2, %v2800_v0  ;;  %v1779_v5 = vpop.f32.mrb[3].mxu0 }
 0x19a   :  { %vm1946_vm1 = vcmp.ge.f32.partialorder %v2802_v2, 0.0  ;;  %v1950_v8 = vmul.f32 0.2, %v2802_v2  ;;  %v2450_v5 = vrot.slane %v2445_v63, %v4287_v57 }
 0x19b   :  { %v1953_v9 = vsel %vm1945_vm0, %v2800_v0, %v1949_v4 }
 0x19c   :  { %v1954_v10 = vsel %vm1946_vm1, %v2802_v2, %v1950_v8  ;;  %v1957_v14 = vpack.c.bf16 %v1953_v9, %v1953_v9 }
 0x19d   :  { %v1958_v11 = vpack.c.bf16 %v1954_v10, %v1954_v10  ;;  %v2454_v10 = vrot.slane %v2445_v63, %v4295_v59 }
 0x19f   :  { %2389 = vmatprep.mubr.bf16.mxu0 %v1958_v11 }
 0x1a0   :  { %2390 = vmatmul.mubr.bf16.vlgmr.msra.gmra.mrb[4].mxu0 %v1957_v14 }
 0x1a1   :  { %2399 = vmatpush1.bf16.msra.mxu0 %v3271_v12 }
 0x1a2   :  { %2400 = vmatprep.subr.bf16.mxu0 %v3276_v15 }
 0x1a5   :  { %2401 = vmatpush1.bf16.msra.mxu0 %v3274_v16 }
 0x1a6   :  { %2402 = vmatprep.subr.bf16.mxu0 %v3279_v17 }
 0x1a9   :  { %2403 = vmatpush1.bf16.msra.mxu0 %v3277_v21  ;;  %v2463_v21 = vstv %s4421_s6 }
 0x1aa   :  { %2404 = vmatprep.subr.bf16.mxu0 %v3282_v22 }
 0x1ad   :  { %2405 = vmatpush1.bf16.msra.mxu0 %v3280_v18 }
 0x1ae   :  { %2406 = vmatprep.subr.bf16.mxu0 %v3285_v6 }
 0x1b1   :  { %2407 = vmatpush1.bf16.msra.mxu0 %v3283_v13 }
 0x1b2   :  { %2408 = vmatprep.subr.bf16.mxu0 %v3288_v19 }
 0x1b5   :  { %2409 = vmatpush1.bf16.msra.mxu0 %v3286_v23 }
 0x1b6   :  { %2410 = vmatprep.subr.bf16.mxu0 %v3291_v7 }
 0x1b9   :  { %2411 = vmatpush1.bf16.msra.mxu0 %v3289_v24 }
 0x1ba   :  { %2412 = vmatprep.subr.bf16.mxu0 %v3294_v25 }
 0x1bd   :  { %2413 = vmatpush1.bf16.msra.mxu0 %v3292_v34 }
 0x1be   :  { %2414 = vmatprep.subr.bf16.mxu0 %v3297_v51 }
 0x1c1   :  { %2415 = vmatpush1.bf16.msra.mxu0 %v3295_v26 }
 0x1c2   :  { %2416 = vmatprep.subr.bf16.mxu0 %v3300_v27 }
 0x1c5   :  { %2417 = vmatpush1.bf16.msra.mxu0 %v3298_v28 }
 0x1c6   :  { %2418 = vmatprep.subr.bf16.mxu0 %v3303_v29 }
 0x1c9   :  { %2419 = vmatpush1.bf16.msra.mxu0 %v3301_v30 }
 0x1ca   :  { %2420 = vmatprep.subr.bf16.mxu0 %v3306_v31 }
 0x1cd   :  { %2421 = vmatpush1.bf16.msra.mxu0 %v3304_v32 }
 0x1ce   :  { %2422 = vmatprep.subr.bf16.mxu0 %v3309_v33 }
 0x1d1   :  { %2423 = vmatpush1.bf16.msra.mxu0 %v3307_v35 }
 0x1d2   :  { %2424 = vmatprep.subr.bf16.mxu0 %v3312_v36 }
 0x1d5   :  { %2425 = vmatpush1.bf16.msra.mxu0 %v3310_v37 }
 0x1d6   :  { %2426 = vmatprep.subr.bf16.mxu0 %v3315_v38 }
 0x1d9   :  { %2427 = vmatpush1.bf16.msra.mxu0 %v3313_v39 }
 0x1da   :  { %2428 = vmatprep.subr.bf16.mxu0 %v3318_v40 }
 0x1dd   :  { %2429 = vmatpush1.bf16.msra.mxu0 %v3316_v41 }
 0x215   :  { %v1938_v46 = vpop.f32.mrb[4].mxu1 }
 0x216   :  { %v2803_v47 = vadd.f32 %v1938_v46, %v300_v44  ;;  %v1940_v48 = vpop.f32.mrb[5].mxu1 }
 0x217   :  { %v2804_v49 = vadd.f32 %v1940_v48, %v304_v45  ;;  %v1942_v50 = vpop.f32.mrb[6].mxu1 }
 0x218   :  { %vm1947_vm2 = vcmp.ge.f32.partialorder %v2803_v47, 0.0  ;;  %v1951_v52 = vmul.f32 0.2, %v2803_v47  ;;  %v1943_v53 = vpop.f32.mrb[7].mxu1 }
 0x219   :  { %vm1948_vm3 = vcmp.ge.f32.partialorder %v2804_v49, 0.0  ;;  %v1952_v54 = vmul.f32 0.2, %v2804_v49 }
 0x21a   :  { %v1955_v55 = vsel %vm1947_vm2, %v2803_v47, %v1951_v52 }
 0x21b   :  { %v1956_v60 = vsel %vm1948_vm3, %v2804_v49, %v1952_v54  ;;  %v1959_v61 = vpack.c.bf16 %v1955_v55, %v1955_v55 }
 0x21c   :  { %v1960_v20 = vpack.c.bf16 %v1956_v60, %v1956_v60 }
 0x21e   :  { %2430 = vmatprep.mubr.bf16.mxu0 %v1960_v20 }
 0x21f   :  { %2431 = vmatmul.mubr.bf16.vlgmr.msra.gmra.mrb[4].mxu0 %v1959_v61 }
 0x2f2   :  { %v2432_v0 = vpop.f32.mrb[4].mxu0 }
 0x2f3   :  { %v2805_v1 = vadd.f32 %v2432_v0, %v2030_v58  ;;  %v2434_v2 = vpop.f32.mrb[5].mxu0 }
 0x2f4   :  { %v2806_v3 = vadd.f32 %v2434_v2, %v2034_v62  ;;  %v2436_v4 = vpop.f32.mrb[6].mxu0 }
 0x2f5   :  { %vm2439_vm4 = vcmp.ge.f32.partialorder %v2805_v1, 0.0  ;;  %v2441_v8 = vmul.f32 0.2, %v2805_v1  ;;  %v2437_v9 = vpop.f32.mrb[7].mxu0 }
 0x2f6   :  { %vm2440_vm5 = vcmp.ge.f32.partialorder %v2806_v3, 0.0  ;;  %v2442_v11 = vmul.f32 0.2, %v2806_v3 }
 0x2f7   :  { %v2443_v12 = vsel %vm2439_vm4, %v2805_v1, %v2441_v8 }
 0x2f8   :  { %v2444_v14 = vsel %vm2440_vm5, %v2806_v3, %v2442_v11  ;;  %v2457_v15 = vmul.f32 %v2450_v5, %v2443_v12 }
 0x2f9   :  { %v2458_v16 = vmul.f32 %v2454_v10, %v2444_v14 }
 0x2fb   :  { %v2459_v17 = vadd.f32 %v2458_v16, %v2457_v15 }
 0x2fd   :  { %2460 = vadd.xlane.f32.xlu0 %v2459_v17 }
 0x38a   :  { %v2461_v22 = vpop.xlane.xlu0 %2460 }
 0x38b   :  { %v2464_v57 = vadd.f32 %v2463_v21, %v2461_v22 }
 0x38d   :  { %2466 = vst.msk [vmem:[%s4422_s7] sm:$0xff] %vm2465_vm6, %v2464_v57 }

</bundles_post_ra>
